<compile_context>
chip_gen: v7x
topology: tpu7x:2x2x1
jax: 0.10.0
libtpu: 0.0.40
codegen_flags: <defaults>
</compile_context>

<pallas_src>
import jax
import jax.numpy as jnp
from jax.experimental import pallas as pl
from jax.experimental.pallas import tpu as pltpu


def autoencoder_kernel(x_ref,
                       w1_ref, b1_ref,   # encoder layer 1: D   -> HID
                       w2_ref, b2_ref,   # encoder layer 2: HID -> LAT
                       w3_ref, b3_ref,   # decoder layer 1: LAT -> HID
                       w4_ref, b4_ref,   # decoder layer 2: HID -> D
                       out_ref):
    x = x_ref[...]                                    # (TB, D) f32 activation tile

    # ---- Encoder ----
    h1 = jnp.dot(x.astype(jnp.bfloat16), w1_ref[...],
                 preferred_element_type=jnp.float32) + b1_ref[...]
    h1 = jnp.maximum(h1, 0.0)                         # ReLU (f32 VPU path, v5e-safe)
    z = jnp.dot(h1.astype(jnp.bfloat16), w2_ref[...],
                preferred_element_type=jnp.float32) + b2_ref[...]

    # ---- Decoder ----
    h2 = jnp.dot(z.astype(jnp.bfloat16), w3_ref[...],
                 preferred_element_type=jnp.float32) + b3_ref[...]
    h2 = jnp.maximum(h2, 0.0)                         # ReLU
    y = jnp.dot(h2.astype(jnp.bfloat16), w4_ref[...],
                preferred_element_type=jnp.float32) + b4_ref[...]

    # Sigmoid via exp (EUP) + approx reciprocal (EUP vrcp) — keeps the VALU slot free.
    recon = pl.reciprocal(1.0 + jnp.exp(-y), approx=True)
    out_ref[...] = recon.astype(out_ref.dtype)        # reconstruction in [0, 1]


def make_linear_params(key, fan_in, fan_out):
    """PyTorch-style Linear init: U(-1/sqrt(fan_in), 1/sqrt(fan_in)).

    Weights are stored in bfloat16 (MXU operand dtype); biases stay float32.
    """
    kw, kb = jax.random.split(key)
    bound = 1.0 / jnp.sqrt(jnp.float32(fan_in))
    w = jax.random.uniform(kw, (fan_in, fan_out), jnp.float32, -bound, bound)
    b = jax.random.uniform(kb, (1, fan_out), jnp.float32, -bound, bound)
    return w.astype(jnp.bfloat16), b


def _round_up(x, m):
    return (x + m - 1) // m * m


def autoencoder_forward(x_nchw, params, out_dtype=jnp.float32):
    """x_nchw: (B, C, H, W) float32 -> reconstruction (B, C, H, W) in out_dtype."""
    B, C, H, W = x_nchw.shape
    D = C * H * W
    x_flat = x_nchw.reshape(B, D)

    (w1, b1), (w2, b2), (w3, b3), (w4, b4) = params
    HID = w1.shape[1]
    LAT = w2.shape[1]

    # Batch tile: multiple of 8 (f32 sublane), capped at 512 (VMEM-limited, not
    # MXU-limited).  Chosen so the grid has >= 2 steps whenever the padded
    # batch allows it (keeps both v7x TensorCores busy; harmless elsewhere).
    TB_CAP = 512
    B_pad8 = _round_up(B, 8)
    TB = max(8, min(TB_CAP, _round_up(pl.cdiv(B_pad8, 2), 8)))
    B_pad = _round_up(B, TB)
    if B_pad != B:
        # Padded rows produce garbage reconstructions; they are sliced off below.
        x_flat = jnp.pad(x_flat, ((0, B_pad - B), (0, 0)))
    grid = (B_pad // TB,)

    # Weights / biases: constant index_map -> fetched once, resident across steps.
    const = lambda i: (0, 0)
    in_specs = [
        pl.BlockSpec((TB, D), lambda i: (i, 0)),      # x tile (double-buffered)
        pl.BlockSpec((D, HID), const),   pl.BlockSpec((1, HID), const),
        pl.BlockSpec((HID, LAT), const), pl.BlockSpec((1, LAT), const),
        pl.BlockSpec((LAT, HID), const), pl.BlockSpec((1, HID), const),
        pl.BlockSpec((HID, D), const),   pl.BlockSpec((1, D), const),
    ]
    out_spec = pl.BlockSpec((TB, D), lambda i: (i, 0))

    # Advisory cost estimate so XLA schedules neighbors around this call well.
    param_bytes = sum(int(a.size) * a.dtype.itemsize for pair in params for a in pair)
    out_bytes = jnp.dtype(out_dtype).itemsize
    cost = pl.CostEstimate(
        flops=2 * B_pad * (D * HID + HID * LAT + LAT * HID + HID * D),
        transcendentals=B_pad * D,                    # exp in the sigmoid
        bytes_accessed=B_pad * D * 4 + B_pad * D * out_bytes + param_bytes,
    )

    out_flat = pl.pallas_call(
        autoencoder_kernel,
        out_shape=jax.ShapeDtypeStruct((B_pad, D), out_dtype),
        grid=grid,
        in_specs=in_specs,
        out_specs=out_spec,
        compiler_params=pltpu.CompilerParams(
            dimension_semantics=("parallel",),        # shard batch tiles across TCs (v7x)
            vmem_limit_bytes=32 * 1024 * 1024,        # explicit budget; safe on v5e/v6e/v7x
        ),
        cost_estimate=cost,
    )(x_flat, w1, b1, w2, b2, w3, b3, w4, b4)

    return out_flat[:B].reshape(B, C, H, W)


if __name__ == "__main__":
    # Small shapes consistent with an image autoencoder forward pass.
    B, C, H, W = 2, 4, 16, 16
    D = C * H * W          # 1024 (lane-dense output width)
    HID = 256              # encoder/decoder hidden width
    LAT = 128              # latent dimension

    root = jax.random.PRNGKey(0)
    kx, k1, k2, k3, k4 = jax.random.split(root, 5)

    x = jax.random.uniform(kx, (B, C, H, W), jnp.float32)

    params = (
        make_linear_params(k1, D, HID),     # encoder fc1
        make_linear_params(k2, HID, LAT),   # encoder fc2 (latent)
        make_linear_params(k3, LAT, HID),   # decoder fc1
        make_linear_params(k4, HID, D),     # decoder fc2 (reconstruction)
    )

    # float32 output matches the original module's semantics; pass
    # out_dtype=jnp.bfloat16 to halve the output HBM write if acceptable.
    out = autoencoder_forward(x, params, out_dtype=jnp.float32)
    out = jax.block_until_ready(out)

    # Pure-JAX reference with the same bf16-operand / f32-accumulate semantics.
    def ref_forward(x_nchw, params):
        (w1, b1), (w2, b2), (w3, b3), (w4, b4) = params
        xf = x_nchw.reshape(B, D)
        h1 = jnp.maximum(
            jnp.dot(xf.astype(jnp.bfloat16), w1, preferred_element_type=jnp.float32) + b1, 0.0)
        z = jnp.dot(h1.astype(jnp.bfloat16), w2, preferred_element_type=jnp.float32) + b2
        h2 = jnp.maximum(
            jnp.dot(z.astype(jnp.bfloat16), w3, preferred_element_type=jnp.float32) + b3, 0.0)
        y = jnp.dot(h2.astype(jnp.bfloat16), w4, preferred_element_type=jnp.float32) + b4
        return jax.nn.sigmoid(y).reshape(B, C, H, W)

    ref = jax.block_until_ready(ref_forward(x, params))
    assert out.shape == (B, C, H, W)
    assert jnp.allclose(out, ref, atol=1e-2, rtol=1e-2), \
        f"max abs err {jnp.max(jnp.abs(out - ref))}"

    print("KERNEL_OK")
</pallas_src>

<mosaic_0001>
module attributes {stable_mosaic.version = 11 : i64} {
  func.func @autoencoder_kernel(%arg0: i32, %arg1: memref<8x1024xf32, #tpu.memory_space<vmem>>, %arg2: memref<1024x256xbf16, #tpu.memory_space<vmem>>, %arg3: memref<1x256xf32, #tpu.memory_space<vmem>>, %arg4: memref<256x128xbf16, #tpu.memory_space<vmem>>, %arg5: memref<1x128xf32, #tpu.memory_space<vmem>>, %arg6: memref<128x256xbf16, #tpu.memory_space<vmem>>, %arg7: memref<1x256xf32, #tpu.memory_space<vmem>>, %arg8: memref<256x1024xbf16, #tpu.memory_space<vmem>>, %arg9: memref<1x1024xf32, #tpu.memory_space<vmem>>, %arg10: memref<8x1024xf32, #tpu.memory_space<vmem>>) attributes {dimension_semantics = [#tpu.dimension_semantics<parallel>], iteration_bounds = array<i64: 1>, scalar_prefetch = 0 : i64, scratch_operands = 0 : i64, tpu.core_type = #tpu.core_type<tc>, window_params = [{transform_indices = @transform_0, window_bounds = array<i64: 8, 1024>}, {pipeline_mode = #tpu.pipeline_mode<synchronous>, transform_indices = @transform_1, window_bounds = array<i64: 1024, 256>}, {pipeline_mode = #tpu.pipeline_mode<synchronous>, transform_indices = @transform_2, window_bounds = array<i64: 1, 256>}, {pipeline_mode = #tpu.pipeline_mode<synchronous>, transform_indices = @transform_3, window_bounds = array<i64: 256, 128>}, {pipeline_mode = #tpu.pipeline_mode<synchronous>, transform_indices = @transform_4, window_bounds = array<i64: 1, 128>}, {pipeline_mode = #tpu.pipeline_mode<synchronous>, transform_indices = @transform_5, window_bounds = array<i64: 128, 256>}, {pipeline_mode = #tpu.pipeline_mode<synchronous>, transform_indices = @transform_6, window_bounds = array<i64: 1, 256>}, {pipeline_mode = #tpu.pipeline_mode<synchronous>, transform_indices = @transform_7, window_bounds = array<i64: 256, 1024>}, {pipeline_mode = #tpu.pipeline_mode<synchronous>, transform_indices = @transform_8, window_bounds = array<i64: 1, 1024>}, {transform_indices = @transform_9, window_bounds = array<i64: 8, 1024>}]} {
    %c0 = arith.constant 0 : index
    %c0_0 = arith.constant 0 : index
    %0 = vector.load %arg1[%c0, %c0_0] : memref<8x1024xf32, #tpu.memory_space<vmem>>, vector<8x1024xf32>
    %1 = arith.truncf %0 : vector<8x1024xf32> to vector<8x1024xbf16>
    %c0_1 = arith.constant 0 : index
    %c0_2 = arith.constant 0 : index
    %2 = vector.load %arg2[%c0_1, %c0_2] : memref<1024x256xbf16, #tpu.memory_space<vmem>>, vector<1024x256xbf16>
    %cst = arith.constant dense<0.000000e+00> : vector<8x256xf32>
    %3 = tpu.matmul %1, %2, %cst {dimension_numbers = #tpu.dot_dimension_numbers<[1], [0], [0], [1], [0, 0, 1, 1], [], []>} : vector<8x1024xbf16>, vector<1024x256xbf16>, vector<8x256xf32> -> vector<8x256xf32>
    %c0_3 = arith.constant 0 : index
    %c0_4 = arith.constant 0 : index
    %4 = vector.load %arg3[%c0_3, %c0_4] : memref<1x256xf32, #tpu.memory_space<vmem>>, vector<1x256xf32>
    %5 = vector.broadcast %4 : vector<1x256xf32> to vector<8x256xf32>
    %6 = arith.addf %3, %5 : vector<8x256xf32>
    %cst_5 = arith.constant 0.000000e+00 : f32
    %7 = vector.broadcast %cst_5 : f32 to vector<8x256xf32>
    %8 = arith.maximumf %6, %7 : vector<8x256xf32>
    %9 = arith.truncf %8 : vector<8x256xf32> to vector<8x256xbf16>
    %c0_6 = arith.constant 0 : index
    %c0_7 = arith.constant 0 : index
    %10 = vector.load %arg4[%c0_6, %c0_7] : memref<256x128xbf16, #tpu.memory_space<vmem>>, vector<256x128xbf16>
    %cst_8 = arith.constant dense<0.000000e+00> : vector<8x128xf32>
    %11 = tpu.matmul %9, %10, %cst_8 {dimension_numbers = #tpu.dot_dimension_numbers<[1], [0], [0], [1], [0, 0, 1, 1], [], []>} : vector<8x256xbf16>, vector<256x128xbf16>, vector<8x128xf32> -> vector<8x128xf32>
    %c0_9 = arith.constant 0 : index
    %c0_10 = arith.constant 0 : index
    %12 = vector.load %arg5[%c0_9, %c0_10] : memref<1x128xf32, #tpu.memory_space<vmem>>, vector<1x128xf32>
    %13 = vector.broadcast %12 : vector<1x128xf32> to vector<8x128xf32>
    %14 = arith.addf %11, %13 : vector<8x128xf32>
    %15 = arith.truncf %14 : vector<8x128xf32> to vector<8x128xbf16>
    %c0_11 = arith.constant 0 : index
    %c0_12 = arith.constant 0 : index
    %16 = vector.load %arg6[%c0_11, %c0_12] : memref<128x256xbf16, #tpu.memory_space<vmem>>, vector<128x256xbf16>
    %cst_13 = arith.constant dense<0.000000e+00> : vector<8x256xf32>
    %17 = tpu.matmul %15, %16, %cst_13 {dimension_numbers = #tpu.dot_dimension_numbers<[1], [0], [0], [1], [0, 0, 1, 1], [], []>} : vector<8x128xbf16>, vector<128x256xbf16>, vector<8x256xf32> -> vector<8x256xf32>
    %c0_14 = arith.constant 0 : index
    %c0_15 = arith.constant 0 : index
    %18 = vector.load %arg7[%c0_14, %c0_15] : memref<1x256xf32, #tpu.memory_space<vmem>>, vector<1x256xf32>
    %19 = vector.broadcast %18 : vector<1x256xf32> to vector<8x256xf32>
    %20 = arith.addf %17, %19 : vector<8x256xf32>
    %cst_16 = arith.constant 0.000000e+00 : f32
    %21 = vector.broadcast %cst_16 : f32 to vector<8x256xf32>
    %22 = arith.maximumf %20, %21 : vector<8x256xf32>
    %23 = arith.truncf %22 : vector<8x256xf32> to vector<8x256xbf16>
    %c0_17 = arith.constant 0 : index
    %c0_18 = arith.constant 0 : index
    %24 = vector.load %arg8[%c0_17, %c0_18] : memref<256x1024xbf16, #tpu.memory_space<vmem>>, vector<256x1024xbf16>
    %cst_19 = arith.constant dense<0.000000e+00> : vector<8x1024xf32>
    %25 = tpu.matmul %23, %24, %cst_19 {dimension_numbers = #tpu.dot_dimension_numbers<[1], [0], [0], [1], [0, 0, 1, 1], [], []>} : vector<8x256xbf16>, vector<256x1024xbf16>, vector<8x1024xf32> -> vector<8x1024xf32>
    %c0_20 = arith.constant 0 : index
    %c0_21 = arith.constant 0 : index
    %26 = vector.load %arg9[%c0_20, %c0_21] : memref<1x1024xf32, #tpu.memory_space<vmem>>, vector<1x1024xf32>
    %27 = vector.broadcast %26 : vector<1x1024xf32> to vector<8x1024xf32>
    %28 = arith.addf %25, %27 : vector<8x1024xf32>
    %cst_22 = arith.constant 0.000000e+00 : f32
    %29 = vector.broadcast %cst_22 : f32 to vector<8x1024xf32>
    %30 = arith.subf %29, %28 : vector<8x1024xf32>
    %31 = math.exp %30 : vector<8x1024xf32>
    %cst_23 = arith.constant 1.000000e+00 : f32
    %32 = vector.broadcast %cst_23 : f32 to vector<8x1024xf32>
    %33 = arith.addf %32, %31 : vector<8x1024xf32>
    %34 = tpu.reciprocal %33 {approx = true} : vector<8x1024xf32> -> vector<8x1024xf32>
    %c0_24 = arith.constant 0 : index
    %c0_25 = arith.constant 0 : index
    %35 = vector.load %arg10[%c0_24, %c0_25] : memref<8x1024xf32, #tpu.memory_space<vmem>>, vector<8x1024xf32>
    tpu.vector_store %arg10[%c0_24, %c0_25], %34 {strides = array<i32>} : memref<8x1024xf32, #tpu.memory_space<vmem>>, vector<8x1024xf32>,
    return
  }
  func.func @transform_0(%arg0: i32) -> (i32, i32) {
    %c0_i32 = arith.constant 0 : i32
    %c0_i32_0 = arith.constant 0 : i32
    return %arg0, %c0_i32 : i32, i32
  }
  func.func @transform_1(%arg0: i32) -> (i32, i32) {
    %c0_i32 = arith.constant 0 : i32
    %c0_i32_0 = arith.constant 0 : i32
    %c0_i32_1 = arith.constant 0 : i32
    return %c0_i32, %c0_i32_0 : i32, i32
  }
  func.func @transform_2(%arg0: i32) -> (i32, i32) {
    %c0_i32 = arith.constant 0 : i32
    %c0_i32_0 = arith.constant 0 : i32
    %c0_i32_1 = arith.constant 0 : i32
    return %c0_i32, %c0_i32_0 : i32, i32
  }
  func.func @transform_3(%arg0: i32) -> (i32, i32) {
    %c0_i32 = arith.constant 0 : i32
    %c0_i32_0 = arith.constant 0 : i32
    %c0_i32_1 = arith.constant 0 : i32
    return %c0_i32, %c0_i32_0 : i32, i32
  }
  func.func @transform_4(%arg0: i32) -> (i32, i32) {
    %c0_i32 = arith.constant 0 : i32
    %c0_i32_0 = arith.constant 0 : i32
    %c0_i32_1 = arith.constant 0 : i32
    return %c0_i32, %c0_i32_0 : i32, i32
  }
  func.func @transform_5(%arg0: i32) -> (i32, i32) {
    %c0_i32 = arith.constant 0 : i32
    %c0_i32_0 = arith.constant 0 : i32
    %c0_i32_1 = arith.constant 0 : i32
    return %c0_i32, %c0_i32_0 : i32, i32
  }
  func.func @transform_6(%arg0: i32) -> (i32, i32) {
    %c0_i32 = arith.constant 0 : i32
    %c0_i32_0 = arith.constant 0 : i32
    %c0_i32_1 = arith.constant 0 : i32
    return %c0_i32, %c0_i32_0 : i32, i32
  }
  func.func @transform_7(%arg0: i32) -> (i32, i32) {
    %c0_i32 = arith.constant 0 : i32
    %c0_i32_0 = arith.constant 0 : i32
    %c0_i32_1 = arith.constant 0 : i32
    return %c0_i32, %c0_i32_0 : i32, i32
  }
  func.func @transform_8(%arg0: i32) -> (i32, i32) {
    %c0_i32 = arith.constant 0 : i32
    %c0_i32_0 = arith.constant 0 : i32
    %c0_i32_1 = arith.constant 0 : i32
    return %c0_i32, %c0_i32_0 : i32, i32
  }
  func.func @transform_9(%arg0: i32) -> (i32, i32) {
    %c0_i32 = arith.constant 0 : i32
    %c0_i32_0 = arith.constant 0 : i32
    return %arg0, %c0_i32 : i32, i32
  }
}

</mosaic_0001>

<bundles_post_ra>
// kernel: tpu_custom_call.1
= control target key start
LH: loop header
LB: loop body
LE: loop exit
PB: predicated region body
PF: predicated region fallthrough
CT: control target
= control target key end

     0   :  { %14 = vsyncpa [#allocation3], 0  ;;  %s3374_s0 = inlined_call_operand.hbm [shape: f32[8,1024], index: 0, kind: input, shape index: {}]   ;;  %s3375_s1 = inlined_call_operand.hbm [shape: bf16[1024,256], index: 1, kind: input, shape index: {}]   ;;  %s3376_s2 = inlined_call_operand.vmem [shape: f32[1,256], index: 2, kind: input, shape index: {}]   ;;  %s3377_s3 = inlined_call_operand.hbm [shape: bf16[256,128], index: 3, kind: input, shape index: {}]   ;;  %s3378_s4 = inlined_call_operand.vmem [shape: f32[1,128], index: 4, kind: input, shape index: {}]   ;;  %s3379_s5 = inlined_call_operand.hbm [shape: bf16[128,256], index: 5, kind: input, shape index: {}]   ;;  %s3380_s6 = inlined_call_operand.vmem [shape: f32[1,256], index: 6, kind: input, shape index: {}]   ;;  %s3381_s7 = inlined_call_operand.hbm [shape: bf16[256,1024], index: 7, kind: input, shape index: {}]   ;;  %s3382_s8 = inlined_call_operand.vmem [shape: f32[1,1024], index: 8, kind: input, shape index: {}]   ;;  %s3383_s9 = inlined_call_operand.hbm [shape: f32[8,1024], index: 9, kind: output, shape index: {}]  }
   0x1   :  { %15 = vsyncpa [#allocation6], 0 }
   0x2   :  { %16 = vsyncpa [#allocation9], 0 }
   0x3   :  { %17 = vsyncpa [#allocation4], 0  ;;  %s3174_s30 = smov [#allocation5]   ;;  %s3034_s13 = scalar_lea.hbm %s3375_s1, 16384 }
   0x4   :  { %s33_s10 = sshll.u32 %s3174_s30, 4  ;;  %p3035_p0 = scmp.ne.s32.totalorder %s3375_s1, %s3034_s13  ;;  %s34_s10 = int_to_ptr.vmem [resolvable:$true] %s33_s10 }
   0x5   :  { %p3038_p1 = scmp.lt.u32.totalorder %s3034_s13, %s3375_s1 }
   0x7   :  { %p3040_p2 = pnand %p3038_p1, %p3035_p0 }
   0x9   :  { %3043 = shalt.err (!%p3040_p2)
}
   0xa   :  { %s3044_s18 = scalar_lea.vmem %s34_s10, 16384  ;;  %p3049_p4 = scmp.lt.s32.totalorder %s34_s10, %s34_s10 }
   0xb   :  { %p3045_p3 = scmp.ne.s32.totalorder %s34_s10, %s3044_s18  ;;  %p3050_p5 = scmp.lt.s32.totalorder %s3044_s18, %s3044_s18 }
   0xd   :  { %p3051_p6 = por %p3050_p5, %p3049_p4 }
   0xf   :  { %p3052_p7 = pnand %p3051_p6, %p3045_p3 }
  0x11   :  { %3055 = shalt.err (!%p3052_p7)
}
  0x12   :  { %s3175_s19 = smov 128   ;;  %s3176_s20 = smov 8  }
  0x13   :  { %39 = dma.hbm_to_vmem [thread:$0]  %s3375_s1, 16384, %s34_s10, [#allocation6], %s3175_s19, %s3175_s19, %s3176_s20  }
  0x14   :  { %s3177_s23 = smov [#allocation8]   ;;  %s3178_s25 = smov [#allocation2]  }
  0x15   :  { %s61_s24 = sshll.u32 %s3177_s23, 4  ;;  %s24_s26 = sshll.u32 %s3178_s25, 4  ;;  %s62_s24 = int_to_ptr.vmem [resolvable:$true] %s61_s24  ;;  %s25_s26 = int_to_ptr.vmem [resolvable:$true] %s24_s26 }
  0x16   :  { %s3056_s29 = scalar_lea.hbm %s3379_s5, 2048 }
  0x17   :  { %p3057_p8 = scmp.ne.s32.totalorder %s3379_s5, %s3056_s29  ;;  %p3060_p9 = scmp.lt.u32.totalorder %s3056_s29, %s3379_s5 }
  0x19   :  { %p3062_p10 = pnand %p3060_p9, %p3057_p8 }
  0x1b   :  { %3065 = shalt.err (!%p3062_p10)
}
  0x1c   :  { %s3066_s1 = scalar_lea.vmem %s62_s24, 2048  ;;  %p3071_p12 = scmp.lt.s32.totalorder %s62_s24, %s62_s24 }
  0x1d   :  { %p3067_p11 = scmp.ne.s32.totalorder %s62_s24, %s3066_s1  ;;  %p3072_p13 = scmp.lt.s32.totalorder %s3066_s1, %s3066_s1 }
  0x1f   :  { %p3073_p0 = por %p3072_p13, %p3071_p12 }
  0x21   :  { %p3074_p1 = pnand %p3073_p0, %p3067_p11 }
  0x23   :  { %3077 = shalt.err (!%p3074_p1)
}
  0x24   :  { %67 = dma.hbm_to_vmem [thread:$0]  %s3379_s5, 2048, %s62_s24, [#allocation9], %s3175_s19, %s3175_s19, %s3176_s20  }
  0x25   :  { %s3078_s17 = scalar_lea.hbm %s3374_s0, 1024 }
  0x26   :  { %p3079_p2 = scmp.ne.s32.totalorder %s3374_s0, %s3078_s17  ;;  %p3082_p3 = scmp.lt.u32.totalorder %s3078_s17, %s3374_s0 }
  0x28   :  { %p3084_p4 = pnand %p3082_p3, %p3079_p2 }
  0x2a   :  { %3087 = shalt.err (!%p3084_p4)
}
  0x2b   :  { %s3088_s25 = scalar_lea.vmem %s25_s26, 1024  ;;  %p3093_p6 = scmp.lt.s32.totalorder %s25_s26, %s25_s26 }
  0x2c   :  { %p3089_p5 = scmp.ne.s32.totalorder %s25_s26, %s3088_s25  ;;  %p3094_p7 = scmp.lt.s32.totalorder %s3088_s25, %s3088_s25 }
  0x2e   :  { %p3095_p8 = por %p3094_p7, %p3093_p6 }
  0x30   :  { %p3096_p9 = pnand %p3095_p8, %p3089_p5 }
  0x32   :  { %3099 = shalt.err (!%p3096_p9)
}
  0x33   :  { %27 = dma.hbm_to_vmem [thread:$0]  %s3374_s0, 1024, %s25_s26, [#allocation3]  }
  0x34   :  { %s3179_s20 = smov [#allocation7]   ;;  %s3100_s29 = scalar_lea.hbm %s3377_s3, 2048 }
  0x35   :  { %s47_s24 = sshll.u32 %s3179_s20, 4  ;;  %p3101_p10 = scmp.ne.s32.totalorder %s3377_s3, %s3100_s29  ;;  %s48_s24 = int_to_ptr.vmem [resolvable:$true] %s47_s24 }
  0x36   :  { %p3104_p11 = scmp.lt.u32.totalorder %s3100_s29, %s3377_s3 }
  0x38   :  { %p3106_p12 = pnand %p3104_p11, %p3101_p10 }
  0x3a   :  { %3109 = shalt.err (!%p3106_p12)
}
  0x3b   :  { %s3110_s1 = scalar_lea.vmem %s48_s24, 2048  ;;  %p3115_p0 = scmp.lt.s32.totalorder %s48_s24, %s48_s24 }
  0x3c   :  { %p3111_p13 = scmp.ne.s32.totalorder %s48_s24, %s3110_s1  ;;  %p3116_p1 = scmp.lt.s32.totalorder %s3110_s1, %s3110_s1 }
  0x3e   :  { %p3117_p2 = por %p3116_p1, %p3115_p0 }
  0x40   :  { %p3118_p3 = pnand %p3117_p2, %p3111_p13 }
  0x42   :  { %3121 = shalt.err (!%p3118_p3)
}
  0x43   :  { %s3180_s0 = smov 64   ;;  %s3181_s26 = smov 4  }
  0x44   :  { %53 = dma.hbm_to_vmem [thread:$0]  %s3377_s3, 2048, %s48_s24, [#allocation6], %s3180_s0, %s3180_s0, %s3181_s26  }
  0x45   :  { %s3182_s15 = smov [#allocation10]   ;;  %s3122_s21 = scalar_lea.hbm %s3381_s7, 16384 }
  0x46   :  { %s75_s16 = sshll.u32 %s3182_s15, 4  ;;  %p3123_p4 = scmp.ne.s32.totalorder %s3381_s7, %s3122_s21  ;;  %s76_s16 = int_to_ptr.vmem [resolvable:$true] %s75_s16 }
  0x47   :  { %p3126_p5 = scmp.lt.u32.totalorder %s3122_s21, %s3381_s7 }
  0x49   :  { %p3128_p6 = pnand %p3126_p5, %p3123_p4 }
  0x4b   :  { %3131 = shalt.err (!%p3128_p6)
}
  0x4c   :  { %s3132_s19 = scalar_lea.vmem %s76_s16, 16384  ;;  %p3137_p8 = scmp.lt.s32.totalorder %s76_s16, %s76_s16 }
  0x4d   :  { %p3133_p7 = scmp.ne.s32.totalorder %s76_s16, %s3132_s19  ;;  %p3138_p9 = scmp.lt.s32.totalorder %s3132_s19, %s3132_s19 }
  0x4f   :  { %p3139_p10 = por %p3138_p9, %p3137_p8 }
  0x51   :  { %p3140_p11 = pnand %p3139_p10, %p3133_p7 }
  0x53   :  { %3143 = shalt.err (!%p3140_p11)
}
  0x54   :  { %s3183_s3 = smov 512   ;;  %s3184_s20 = smov 32  }
  0x55   :  { %81 = dma.hbm_to_vmem [thread:$0]  %s3381_s7, 16384, %s76_s16, [#allocation9], %s3183_s3, %s3183_s3, %s3184_s20  }
  0x56   :  { %3166 = dma.done.wait [#allocation3], 1024  }
  0x57   :  { %3167 = vsyncadd [#allocation3], 4294966272 }
  0x58   :  { %3168 = dma.done.wait [#allocation6], 18432  }
  0x59   :  { %3169 = vsyncadd [#allocation6], 4294948864 }
  0x5a   :  { %3170 = dma.done.wait [#allocation9], 18432  }
  0x5b   :  { %3171 = vsyncadd [#allocation9], 4294948864  ;;  %v2770_v0 = vld [vmem:[#allocation5 + $0x4] ss:$8 sps:$4 sm:$0xff]   ;;  %v2772_v1 = vld [vmem:[#allocation5] ss:$8 sps:$4 sm:$0xff]  }
  0x5c   :  { %896 = vmatprep.subr.bf16.mxu0 %v2770_v0  ;;  %v2773_v2 = vld [vmem:[#allocation5 + $0x14] ss:$8 sps:$4 sm:$0xff]   ;;  %v2775_v3 = vld [vmem:[#allocation5 + $0x10] ss:$8 sps:$4 sm:$0xff]   ;;  %v2776_v4 = vld [vmem:[#allocation5 + $0x24] ss:$8 sps:$4 sm:$0xff]  }
  0x5d   :  { %897 = vmatpush1.bf16.msra.mxu0 %v2772_v1  ;;  %v2778_v5 = vld [vmem:[#allocation5 + $0x20] ss:$8 sps:$4 sm:$0xff]   ;;  %v2779_v6 = vld [vmem:[#allocation5 + $0x34] ss:$8 sps:$4 sm:$0xff]   ;;  %v2781_v7 = vld [vmem:[#allocation5 + $0x30] ss:$8 sps:$4 sm:$0xff]  }
  0x5e   :  { %898 = vmatprep.subr.bf16.mxu0 %v2773_v2  ;;  %v2782_v8 = vld [vmem:[#allocation5 + $0x44] ss:$8 sps:$4 sm:$0xff]   ;;  %v2784_v9 = vld [vmem:[#allocation5 + $0x40] ss:$8 sps:$4 sm:$0xff]   ;;  %v2785_v10 = vld [vmem:[#allocation5 + $0x54] ss:$8 sps:$4 sm:$0xff]  }
  0x5f   :  { %v2787_v11 = vld [vmem:[#allocation5 + $0x50] ss:$8 sps:$4 sm:$0xff]   ;;  %v2788_v12 = vld [vmem:[#allocation5 + $0x64] ss:$8 sps:$4 sm:$0xff]   ;;  %v2790_v15 = vld [vmem:[#allocation5 + $0x60] ss:$8 sps:$4 sm:$0xff]  }
  0x60   :  { %v101_v13 = vld [vmem:[#allocation2 + $0x8] sm:$0xff]  ;;  %v2791_v16 = vld [vmem:[#allocation5 + $0x74] ss:$8 sps:$4 sm:$0xff]   ;;  %v2793_v17 = vld [vmem:[#allocation5 + $0x70] ss:$8 sps:$4 sm:$0xff]  }
  0x61   :  { %899 = vmatpush1.bf16.msra.mxu0 %v2775_v3  ;;  %v109_v14 = vpack.c.bf16 %v101_v13, %v101_v13  ;;  %v2794_v18 = vld [vmem:[#allocation5 + $0x84] ss:$8 sps:$4 sm:$0xff]   ;;  %v2796_v19 = vld [vmem:[#allocation5 + $0x80] ss:$8 sps:$4 sm:$0xff]   ;;  %v2797_v20 = vld [vmem:[#allocation5 + $0x94] ss:$8 sps:$4 sm:$0xff]  }
  0x62   :  { %900 = vmatprep.subr.bf16.mxu0 %v2776_v4  ;;  %v2799_v21 = vld [vmem:[#allocation5 + $0x90] ss:$8 sps:$4 sm:$0xff]   ;;  %v2800_v22 = vld [vmem:[#allocation5 + $0xa4] ss:$8 sps:$4 sm:$0xff]   ;;  %v2802_v23 = vld [vmem:[#allocation5 + $0xa0] ss:$8 sps:$4 sm:$0xff]  }
  0x63   :  { %928 = vmatprep.mubr.bf16.mxu0 %v109_v14  ;;  %v2803_v24 = vld [vmem:[#allocation5 + $0xb4] ss:$8 sps:$4 sm:$0xff]   ;;  %v2805_v25 = vld [vmem:[#allocation5 + $0xb0] ss:$8 sps:$4 sm:$0xff]   ;;  %v2806_v26 = vld [vmem:[#allocation5 + $0xc4] ss:$8 sps:$4 sm:$0xff]  }
  0x64   :  { %v2808_v27 = vld [vmem:[#allocation5 + $0xc0] ss:$8 sps:$4 sm:$0xff]   ;;  %v2809_v28 = vld [vmem:[#allocation5 + $0xd4] ss:$8 sps:$4 sm:$0xff]   ;;  %v2811_v29 = vld [vmem:[#allocation5 + $0xd0] ss:$8 sps:$4 sm:$0xff]  }
  0x65   :  { %901 = vmatpush1.bf16.msra.mxu0 %v2778_v5  ;;  %v2812_v30 = vld [vmem:[#allocation5 + $0xe4] ss:$8 sps:$4 sm:$0xff]   ;;  %v2814_v31 = vld [vmem:[#allocation5 + $0xe0] ss:$8 sps:$4 sm:$0xff]   ;;  %v2815_v32 = vld [vmem:[#allocation5 + $0xf4] ss:$8 sps:$4 sm:$0xff]  }
  0x66   :  { %902 = vmatprep.subr.bf16.mxu0 %v2779_v6  ;;  %v2817_v33 = vld [vmem:[#allocation5 + $0xf0] ss:$8 sps:$4 sm:$0xff]   ;;  %v2820_v34 = vld [vmem:[#allocation5 + $0x104] ss:$8 sps:$4 sm:$0xff]   ;;  %v2818_v38 = vld [vmem:[#allocation5 + $0x100] ss:$8 sps:$4 sm:$0xff]  }
  0x67   :  { %v100_v35 = vld [vmem:[#allocation2] sm:$0xff]  ;;  %v103_v36 = vld [vmem:[#allocation2 + $0x18] sm:$0xff]  ;;  %v102_v6 = vld [vmem:[#allocation2 + $0x10] sm:$0xff] }
  0x68   :  { %v108_v37 = vpack.c.bf16 %v100_v35, %v100_v35  ;;  %v111_v39 = vpack.c.bf16 %v103_v36, %v103_v36  ;;  %v2823_v40 = vld [vmem:[#allocation5 + $0x114] ss:$8 sps:$4 sm:$0xff]   ;;  %v2821_v41 = vld [vmem:[#allocation5 + $0x110] ss:$8 sps:$4 sm:$0xff]   ;;  %v2826_v42 = vld [vmem:[#allocation5 + $0x124] ss:$8 sps:$4 sm:$0xff]  }
  0x69   :  { %903 = vmatpush1.bf16.msra.mxu0 %v2781_v7  ;;  %v2824_v43 = vld [vmem:[#allocation5 + $0x120] ss:$8 sps:$4 sm:$0xff]   ;;  %v2829_v44 = vld [vmem:[#allocation5 + $0x134] ss:$8 sps:$4 sm:$0xff]   ;;  %v2827_v45 = vld [vmem:[#allocation5 + $0x130] ss:$8 sps:$4 sm:$0xff]  }
  0x6a   :  { %904 = vmatprep.subr.bf16.mxu0 %v2782_v8  ;;  %v2832_v46 = vld [vmem:[#allocation5 + $0x144] ss:$8 sps:$4 sm:$0xff]   ;;  %v2830_v47 = vld [vmem:[#allocation5 + $0x140] ss:$8 sps:$4 sm:$0xff]   ;;  %v2835_v48 = vld [vmem:[#allocation5 + $0x154] ss:$8 sps:$4 sm:$0xff]  }
  0x6b   :  { %v2833_v49 = vld [vmem:[#allocation5 + $0x150] ss:$8 sps:$4 sm:$0xff]   ;;  %v2838_v50 = vld [vmem:[#allocation5 + $0x164] ss:$8 sps:$4 sm:$0xff]   ;;  %v2836_v51 = vld [vmem:[#allocation5 + $0x160] ss:$8 sps:$4 sm:$0xff]  }
  0x6c   :  { %v2841_v52 = vld [vmem:[#allocation5 + $0x174] ss:$8 sps:$4 sm:$0xff]   ;;  %v2839_v53 = vld [vmem:[#allocation5 + $0x170] ss:$8 sps:$4 sm:$0xff]   ;;  %v2844_v54 = vld [vmem:[#allocation5 + $0x184] ss:$8 sps:$4 sm:$0xff]  }
  0x6d   :  { %905 = vmatpush1.bf16.msra.mxu0 %v2784_v9  ;;  %v2842_v55 = vld [vmem:[#allocation5 + $0x180] ss:$8 sps:$4 sm:$0xff]   ;;  %v2847_v56 = vld [vmem:[#allocation5 + $0x194] ss:$8 sps:$4 sm:$0xff]   ;;  %v2845_v57 = vld [vmem:[#allocation5 + $0x190] ss:$8 sps:$4 sm:$0xff]   ;;  %v110_v9 = vpack.c.bf16 %v102_v6, %v102_v6 }
  0x6e   :  { %906 = vmatprep.subr.bf16.mxu0 %v2785_v10  ;;  %v2850_v58 = vld [vmem:[#allocation5 + $0x1a4] ss:$8 sps:$4 sm:$0xff]   ;;  %v2848_v59 = vld [vmem:[#allocation5 + $0x1a0] ss:$8 sps:$4 sm:$0xff]   ;;  %v2853_v60 = vld [vmem:[#allocation5 + $0x1b4] ss:$8 sps:$4 sm:$0xff]  }
  0x6f   :  { %v2851_v61 = vld [vmem:[#allocation5 + $0x1b0] ss:$8 sps:$4 sm:$0xff]   ;;  %v2856_v62 = vld [vmem:[#allocation5 + $0x1c4] ss:$8 sps:$4 sm:$0xff]   ;;  %v2854_v63 = vld [vmem:[#allocation5 + $0x1c0] ss:$8 sps:$4 sm:$0xff]  }
  0x70   :  { %v2859_v0 = vld [vmem:[#allocation5 + $0x1d4] ss:$8 sps:$4 sm:$0xff]   ;;  %v2857_v1 = vld [vmem:[#allocation5 + $0x1d0] ss:$8 sps:$4 sm:$0xff]   ;;  %v2862_v2 = vld [vmem:[#allocation5 + $0x1e4] ss:$8 sps:$4 sm:$0xff]  }
  0x71   :  { %907 = vmatpush1.bf16.msra.mxu0 %v2787_v11  ;;  %v2860_v3 = vld [vmem:[#allocation5 + $0x1e0] ss:$8 sps:$4 sm:$0xff]   ;;  %v2865_v4 = vld [vmem:[#allocation5 + $0x1f4] ss:$8 sps:$4 sm:$0xff]   ;;  %v2863_v5 = vld [vmem:[#allocation5 + $0x1f0] ss:$8 sps:$4 sm:$0xff]  }
  0x72   :  { %908 = vmatprep.subr.bf16.mxu0 %v2788_v12  ;;  %v2868_v7 = vld [vmem:[#allocation5 + $0x204] ss:$8 sps:$4 sm:$0xff]   ;;  %v2866_v10 = vld [vmem:[#allocation5 + $0x200] ss:$8 sps:$4 sm:$0xff]   ;;  %v2871_v12 = vld [vmem:[#allocation5 + $0x214] ss:$8 sps:$4 sm:$0xff]  }
  0x73   :  { %v105_v8 = vld [vmem:[#allocation2 + $0x28] sm:$0xff]  ;;  %v2962_v13 = vld [vmem:[#allocation7 + $0x40] sm:$0xff]   ;;  %v2889_v36 = vld [vmem:[#allocation5 + $0x274] ss:$8 sps:$4 sm:$0xff]  }
  0x74   :  { %v113_v11 = vpack.c.bf16 %v105_v8, %v105_v8  ;;  %v2963_v14 = vld [vmem:[#allocation7] sm:$0xff]   ;;  %2721 = vmatprep.subr.bf16.mxu1 %v2962_v13  ;;  %v2937_v8 = vld [vmem:[#allocation5 + $0x374] ss:$8 sps:$4 sm:$0xff]   ;;  %v2941_v13 = vld [vmem:[#allocation5 + $0x390] ss:$8 sps:$4 sm:$0xff]  }
  0x75   :  { %909 = vmatpush1.bf16.msra.mxu0 %v2790_v15  ;;  %v2964_v15 = vld [vmem:[#allocation7 + $0x48] sm:$0xff]   ;;  %2722 = vmatpush3.bf16.msra.mxu1 %v2963_v14 }
  0x76   :  { %910 = vmatprep.subr.bf16.mxu0 %v2791_v16  ;;  %v2869_v16 = vld [vmem:[#allocation5 + $0x210] ss:$8 sps:$4 sm:$0xff]   ;;  %2723 = vmatprep.subr.bf16.mxu1 %v2964_v15  ;;  %v2884_v35 = vld [vmem:[#allocation5 + $0x260] ss:$8 sps:$4 sm:$0xff]   ;;  %v2934_v6 = vld [vmem:[#allocation5 + $0x364] ss:$8 sps:$4 sm:$0xff]  }
  0x77   :  { %v2946_v14 = vld [vmem:[#allocation5 + $0x3a4] ss:$8 sps:$4 sm:$0xff]   ;;  %v2944_v15 = vld [vmem:[#allocation5 + $0x3a0] ss:$8 sps:$4 sm:$0xff]  }
  0x79   :  { %911 = vmatpush1.bf16.msra.mxu0 %v2793_v17  ;;  %v2874_v17 = vld [vmem:[#allocation5 + $0x224] ss:$8 sps:$4 sm:$0xff]  }
  0x7a   :  { %912 = vmatprep.subr.bf16.mxu0 %v2794_v18  ;;  %v2965_v18 = vld [vmem:[#allocation7 + $0x8] sm:$0xff]  }
  0x7b   :  { %2724 = vmatpush3.bf16.msra.mxu1 %v2965_v18  ;;  %v2952_v18 = vld [vmem:[#allocation5 + $0x3c4] ss:$8 sps:$4 sm:$0xff]  }
  0x7d   :  { %913 = vmatpush1.bf16.msra.mxu0 %v2796_v19  ;;  %v2966_v19 = vld [vmem:[#allocation7 + $0x50] sm:$0xff]  }
  0x7e   :  { %914 = vmatprep.subr.bf16.mxu0 %v2797_v20  ;;  %v2872_v20 = vld [vmem:[#allocation5 + $0x220] ss:$8 sps:$4 sm:$0xff]   ;;  %2725 = vmatprep.subr.bf16.mxu1 %v2966_v19 }
  0x7f   :  { %v2950_v19 = vld [vmem:[#allocation5 + $0x3c0] ss:$8 sps:$4 sm:$0xff]  }
  0x81   :  { %915 = vmatpush1.bf16.msra.mxu0 %v2799_v21  ;;  %v2877_v21 = vld [vmem:[#allocation5 + $0x234] ss:$8 sps:$4 sm:$0xff]  }
  0x82   :  { %916 = vmatprep.subr.bf16.mxu0 %v2800_v22  ;;  %v2967_v22 = vld [vmem:[#allocation7 + $0x10] sm:$0xff]  }
  0x83   :  { %2726 = vmatpush3.bf16.msra.mxu1 %v2967_v22  ;;  %v2958_v22 = vld [vmem:[#allocation5 + $0x3e4] ss:$8 sps:$4 sm:$0xff]  }
  0x85   :  { %917 = vmatpush1.bf16.msra.mxu0 %v2802_v23  ;;  %v2968_v23 = vld [vmem:[#allocation7 + $0x58] sm:$0xff]  }
  0x86   :  { %918 = vmatprep.subr.bf16.mxu0 %v2803_v24  ;;  %v2875_v24 = vld [vmem:[#allocation5 + $0x230] ss:$8 sps:$4 sm:$0xff]   ;;  %2727 = vmatprep.subr.bf16.mxu1 %v2968_v23  ;;  %v2956_v23 = vld [vmem:[#allocation5 + $0x3e0] ss:$8 sps:$4 sm:$0xff]  }
  0x89   :  { %919 = vmatpush1.bf16.msra.mxu0 %v2805_v25  ;;  %v2880_v25 = vld [vmem:[#allocation5 + $0x244] ss:$8 sps:$4 sm:$0xff]  }
  0x8a   :  { %920 = vmatprep.subr.bf16.mxu0 %v2806_v26  ;;  %v2969_v26 = vld [vmem:[#allocation7 + $0x18] sm:$0xff]  }
  0x8b   :  { %2728 = vmatpush3.bf16.msra.mxu1 %v2969_v26  ;;  %v106_v26 = vld [vmem:[#allocation2 + $0x30] sm:$0xff] }
  0x8d   :  { %921 = vmatpush1.bf16.msra.mxu0 %v2808_v27  ;;  %v2970_v27 = vld [vmem:[#allocation7 + $0x60] sm:$0xff]  }
  0x8e   :  { %922 = vmatprep.subr.bf16.mxu0 %v2809_v28  ;;  %v2878_v28 = vld [vmem:[#allocation5 + $0x240] ss:$8 sps:$4 sm:$0xff]   ;;  %2729 = vmatprep.subr.bf16.mxu1 %v2970_v27  ;;  %v114_v27 = vpack.c.bf16 %v106_v26, %v106_v26  ;;  %v1436_v26 = vld [vmem:[#allocation10 + $0x158] sm:$0xff] }
  0x91   :  { %923 = vmatpush1.bf16.msra.mxu0 %v2811_v29  ;;  %v2883_v29 = vld [vmem:[#allocation5 + $0x254] ss:$8 sps:$4 sm:$0xff]  }
  0x92   :  { %924 = vmatprep.subr.bf16.mxu0 %v2812_v30  ;;  %v2971_v30 = vld [vmem:[#allocation7 + $0x20] sm:$0xff]  }
  0x93   :  { %2730 = vmatpush3.bf16.msra.mxu1 %v2971_v30  ;;  %v2976_v30 = vld [vmem:[#allocation7 + $0x78] sm:$0xff]  }
  0x95   :  { %925 = vmatpush1.bf16.msra.mxu0 %v2814_v31  ;;  %v2972_v31 = vld [vmem:[#allocation7 + $0x68] sm:$0xff]  }
  0x96   :  { %926 = vmatprep.subr.bf16.mxu0 %v2815_v32  ;;  %v2881_v32 = vld [vmem:[#allocation5 + $0x250] ss:$8 sps:$4 sm:$0xff]   ;;  %2731 = vmatprep.subr.bf16.mxu1 %v2972_v31 }
  0x97   :  { %v2977_v31 = vld [vmem:[#allocation7 + $0x38] sm:$0xff]  }
  0x99   :  { %927 = vmatpush1.bf16.msra.mxu0 %v2817_v33  ;;  %v2886_v33 = vld [vmem:[#allocation5 + $0x264] ss:$8 sps:$4 sm:$0xff]  }
  0x9a   :  { %937 = vmatprep.subr.bf16.mxu0 %v2820_v34  ;;  %v2973_v34 = vld [vmem:[#allocation7 + $0x28] sm:$0xff]  }
  0x9b   :  { %2732 = vmatpush3.bf16.msra.mxu1 %v2973_v34 }
  0x9c   :  { %929 = vmatmul.mubr.bf16.vlgmr.msra.gmra.mrb[0].mxu0 %v108_v37  ;;  %v2887_v37 = vld [vmem:[#allocation5 + $0x270] ss:$8 sps:$4 sm:$0xff]  }
  0x9d   :  { %938 = vmatpush1.bf16.msra.mxu0 %v2818_v38  ;;  %969 = vmatprep.mubr.bf16.mxu0 %v111_v39  ;;  %v2892_v38 = vld [vmem:[#allocation5 + $0x284] ss:$8 sps:$4 sm:$0xff]   ;;  %v2890_v39 = vld [vmem:[#allocation5 + $0x280] ss:$8 sps:$4 sm:$0xff]  }
  0x9e   :  { %939 = vmatprep.subr.bf16.mxu0 %v2823_v40  ;;  %v2895_v40 = vld [vmem:[#allocation5 + $0x294] ss:$8 sps:$4 sm:$0xff]  }
  0xa1   :  { %940 = vmatpush1.bf16.msra.mxu0 %v2821_v41  ;;  %v2893_v41 = vld [vmem:[#allocation5 + $0x290] ss:$8 sps:$4 sm:$0xff]  }
  0xa2   :  { %941 = vmatprep.subr.bf16.mxu0 %v2826_v42  ;;  %v2898_v42 = vld [vmem:[#allocation5 + $0x2a4] ss:$8 sps:$4 sm:$0xff]  }
  0xa5   :  { %942 = vmatpush1.bf16.msra.mxu0 %v2824_v43  ;;  %v2896_v43 = vld [vmem:[#allocation5 + $0x2a0] ss:$8 sps:$4 sm:$0xff]  }
  0xa6   :  { %943 = vmatprep.subr.bf16.mxu0 %v2829_v44  ;;  %v2901_v44 = vld [vmem:[#allocation5 + $0x2b4] ss:$8 sps:$4 sm:$0xff]  }
  0xa9   :  { %944 = vmatpush1.bf16.msra.mxu0 %v2827_v45  ;;  %v2899_v45 = vld [vmem:[#allocation5 + $0x2b0] ss:$8 sps:$4 sm:$0xff]  }
  0xaa   :  { %945 = vmatprep.subr.bf16.mxu0 %v2832_v46  ;;  %v2904_v46 = vld [vmem:[#allocation5 + $0x2c4] ss:$8 sps:$4 sm:$0xff]  }
  0xad   :  { %946 = vmatpush1.bf16.msra.mxu0 %v2830_v47  ;;  %v2902_v47 = vld [vmem:[#allocation5 + $0x2c0] ss:$8 sps:$4 sm:$0xff]  }
  0xae   :  { %947 = vmatprep.subr.bf16.mxu0 %v2835_v48  ;;  %v2907_v48 = vld [vmem:[#allocation5 + $0x2d4] ss:$8 sps:$4 sm:$0xff]  }
  0xb1   :  { %948 = vmatpush1.bf16.msra.mxu0 %v2833_v49  ;;  %v2905_v49 = vld [vmem:[#allocation5 + $0x2d0] ss:$8 sps:$4 sm:$0xff]  }
  0xb2   :  { %949 = vmatprep.subr.bf16.mxu0 %v2838_v50  ;;  %v2910_v50 = vld [vmem:[#allocation5 + $0x2e4] ss:$8 sps:$4 sm:$0xff]  }
  0xb5   :  { %950 = vmatpush1.bf16.msra.mxu0 %v2836_v51  ;;  %v2908_v51 = vld [vmem:[#allocation5 + $0x2e0] ss:$8 sps:$4 sm:$0xff]  }
  0xb6   :  { %951 = vmatprep.subr.bf16.mxu0 %v2841_v52  ;;  %v2913_v52 = vld [vmem:[#allocation5 + $0x2f4] ss:$8 sps:$4 sm:$0xff]  }
  0xb9   :  { %952 = vmatpush1.bf16.msra.mxu0 %v2839_v53  ;;  %v2911_v53 = vld [vmem:[#allocation5 + $0x2f0] ss:$8 sps:$4 sm:$0xff]  }
  0xba   :  { %953 = vmatprep.subr.bf16.mxu0 %v2844_v54  ;;  %v104_v54 = vld [vmem:[#allocation2 + $0x20] sm:$0xff] }
  0xbd   :  { %954 = vmatpush1.bf16.msra.mxu0 %v2842_v55  ;;  %v2916_v55 = vld [vmem:[#allocation5 + $0x304] ss:$8 sps:$4 sm:$0xff]  }
  0xbe   :  { %955 = vmatprep.subr.bf16.mxu0 %v2847_v56  ;;  %v107_v56 = vld [vmem:[#allocation2 + $0x38] sm:$0xff] }
  0xc1   :  { %956 = vmatpush1.bf16.msra.mxu0 %v2845_v57  ;;  %v112_v57 = vpack.c.bf16 %v104_v54, %v104_v54  ;;  %v2984_v54 = vld [vmem:[#allocation8 + $0x20] ss:$8 sps:$4 sm:$0xff]  }
  0xc2   :  { %957 = vmatprep.subr.bf16.mxu0 %v2850_v58  ;;  %v2914_v58 = vld [vmem:[#allocation5 + $0x300] ss:$8 sps:$4 sm:$0xff]  }
  0xc5   :  { %958 = vmatpush1.bf16.msra.mxu0 %v2848_v59  ;;  %v115_v59 = vpack.c.bf16 %v107_v56, %v107_v56  ;;  %v2987_v56 = vld [vmem:[#allocation8 + $0x30] ss:$8 sps:$4 sm:$0xff]  }
  0xc6   :  { %959 = vmatprep.subr.bf16.mxu0 %v2853_v60  ;;  %v2919_v60 = vld [vmem:[#allocation5 + $0x314] ss:$8 sps:$4 sm:$0xff]  }
  0xc9   :  { %960 = vmatpush1.bf16.msra.mxu0 %v2851_v61  ;;  %v2917_v61 = vld [vmem:[#allocation5 + $0x310] ss:$8 sps:$4 sm:$0xff]  }
  0xca   :  { %961 = vmatprep.subr.bf16.mxu0 %v2856_v62  ;;  %v2922_v62 = vld [vmem:[#allocation5 + $0x324] ss:$8 sps:$4 sm:$0xff]  }
  0xcd   :  { %962 = vmatpush1.bf16.msra.mxu0 %v2854_v63  ;;  %v2920_v63 = vld [vmem:[#allocation5 + $0x320] ss:$8 sps:$4 sm:$0xff]  }
  0xce   :  { %963 = vmatprep.subr.bf16.mxu0 %v2859_v0  ;;  %v2925_v0 = vld [vmem:[#allocation5 + $0x334] ss:$8 sps:$4 sm:$0xff]  }
  0xd1   :  { %964 = vmatpush1.bf16.msra.mxu0 %v2857_v1  ;;  %v2923_v1 = vld [vmem:[#allocation5 + $0x330] ss:$8 sps:$4 sm:$0xff]  }
  0xd2   :  { %965 = vmatprep.subr.bf16.mxu0 %v2862_v2  ;;  %v2928_v2 = vld [vmem:[#allocation5 + $0x344] ss:$8 sps:$4 sm:$0xff]  }
  0xd5   :  { %966 = vmatpush1.bf16.msra.mxu0 %v2860_v3  ;;  %v2926_v3 = vld [vmem:[#allocation5 + $0x340] ss:$8 sps:$4 sm:$0xff]  }
  0xd6   :  { %967 = vmatprep.subr.bf16.mxu0 %v2865_v4  ;;  %v2931_v4 = vld [vmem:[#allocation5 + $0x354] ss:$8 sps:$4 sm:$0xff]  }
  0xd9   :  { %968 = vmatpush1.bf16.msra.mxu0 %v2863_v5  ;;  %v2929_v5 = vld [vmem:[#allocation5 + $0x350] ss:$8 sps:$4 sm:$0xff]  }
  0xda   :  { %978 = vmatprep.subr.bf16.mxu0 %v2868_v7  ;;  %v2932_v7 = vld [vmem:[#allocation5 + $0x360] ss:$8 sps:$4 sm:$0xff]  }
  0xdc   :  { %970 = vmatmul.mubr.bf16.vlgmr.msra.gmra.mrb[0].mxu0 %v110_v9  ;;  %v2935_v9 = vld [vmem:[#allocation5 + $0x370] ss:$8 sps:$4 sm:$0xff]  }
  0xdd   :  { %979 = vmatpush1.bf16.msra.mxu0 %v2866_v10  ;;  %1010 = vmatprep.mubr.bf16.mxu0 %v113_v11  ;;  %v2940_v10 = vld [vmem:[#allocation5 + $0x384] ss:$8 sps:$4 sm:$0xff]   ;;  %v2938_v11 = vld [vmem:[#allocation5 + $0x380] ss:$8 sps:$4 sm:$0xff]  }
  0xde   :  { %980 = vmatprep.subr.bf16.mxu0 %v2871_v12  ;;  %v2943_v12 = vld [vmem:[#allocation5 + $0x394] ss:$8 sps:$4 sm:$0xff]  }
  0xe1   :  { %981 = vmatpush1.bf16.msra.mxu0 %v2869_v16  ;;  %v2949_v16 = vld [vmem:[#allocation5 + $0x3b4] ss:$8 sps:$4 sm:$0xff]  }
  0xe2   :  { %982 = vmatprep.subr.bf16.mxu0 %v2874_v17  ;;  %v2947_v17 = vld [vmem:[#allocation5 + $0x3b0] ss:$8 sps:$4 sm:$0xff]  }
  0xe5   :  { %983 = vmatpush1.bf16.msra.mxu0 %v2872_v20  ;;  %v2955_v20 = vld [vmem:[#allocation5 + $0x3d4] ss:$8 sps:$4 sm:$0xff]  }
  0xe6   :  { %984 = vmatprep.subr.bf16.mxu0 %v2877_v21  ;;  %v2953_v21 = vld [vmem:[#allocation5 + $0x3d0] ss:$8 sps:$4 sm:$0xff]  }
  0xe9   :  { %985 = vmatpush1.bf16.msra.mxu0 %v2875_v24  ;;  %v2961_v24 = vld [vmem:[#allocation5 + $0x3f4] ss:$8 sps:$4 sm:$0xff]  }
  0xea   :  { %986 = vmatprep.subr.bf16.mxu0 %v2880_v25  ;;  %v2959_v25 = vld [vmem:[#allocation5 + $0x3f0] ss:$8 sps:$4 sm:$0xff]  }
  0xed   :  { %987 = vmatpush1.bf16.msra.mxu0 %v2878_v28  ;;  %v2974_v28 = vld [vmem:[#allocation7 + $0x70] sm:$0xff]  }
  0xee   :  { %988 = vmatprep.subr.bf16.mxu0 %v2883_v29  ;;  %v2975_v29 = vld [vmem:[#allocation7 + $0x30] sm:$0xff]   ;;  %2733 = vmatprep.subr.bf16.mxu1 %v2974_v28 }
  0xef   :  { %2734 = vmatpush3.bf16.msra.mxu1 %v2975_v29 }
  0xf0   :  { %2735 = vmatprep.subr.bf16.mxu1 %v2976_v30  ;;  %v1444_v30 = vld [vmem:[#allocation10 + $0x198] sm:$0xff] }
  0xf1   :  { %989 = vmatpush1.bf16.msra.mxu0 %v2881_v32  ;;  %v2980_v32 = vld [vmem:[#allocation8 + $0x4] ss:$8 sps:$4 sm:$0xff]  }
  0xf2   :  { %990 = vmatprep.subr.bf16.mxu0 %v2886_v33  ;;  %v246_v33 = vlaneseq }
  0xf3   :  { %2736 = vmatpush3.bf16.msra.mxu1 %v2977_v31  ;;  %v1448_v31 = vld [vmem:[#allocation10 + $0x1b8] sm:$0xff] }
  0xf4   :  { %1348 = vmatprep.subr.bf16.mxu1 %v2980_v32  ;;  %v3297_v34 = vshrl.u32 %v246_v33, 7  ;;  %v2647_v32 = vcombine.low %v1444_v30, %v1448_v31  ;;  %v2648_v33 = vcombine.high %v1444_v30, %v1448_v31 }
  0xf5   :  { %991 = vmatpush1.bf16.msra.mxu0 %v2884_v35 }
  0xf6   :  { %992 = vmatprep.subr.bf16.mxu0 %v2889_v36  ;;  %v3300_v35 = vsub.s32 0, %v3297_v34  ;;  %v244_v36 = vld [vmem:[%s3376_s2] sm:$0x3] }
  0xf9   :  { %993 = vmatpush1.bf16.msra.mxu0 %v2887_v37  ;;  %v3306_v37 = vsub.s32 1, %v3297_v34 }
  0xfa   :  { %994 = vmatprep.subr.bf16.mxu0 %v2892_v38  ;;  %v249_v38 = vrot.slane %v244_v36, %v3300_v35 }
  0xfd   :  { %995 = vmatpush1.bf16.msra.mxu0 %v2890_v39  ;;  %v253_v39 = vrot.slane %v244_v36, %v3306_v37  ;;  %v1452_v36 = vld [vmem:[#allocation10 + $0x1d8] sm:$0xff] }
  0xfe   :  { %996 = vmatprep.subr.bf16.mxu0 %v2895_v40 }
 0x101   :  { %997 = vmatpush1.bf16.msra.mxu0 %v2893_v41 }
 0x102   :  { %998 = vmatprep.subr.bf16.mxu0 %v2898_v42 }
 0x105   :  { %999 = vmatpush1.bf16.msra.mxu0 %v2896_v43 }
 0x106   :  { %1000 = vmatprep.subr.bf16.mxu0 %v2901_v44 }
 0x109   :  { %1001 = vmatpush1.bf16.msra.mxu0 %v2899_v45 }
 0x10a   :  { %1002 = vmatprep.subr.bf16.mxu0 %v2904_v46 }
 0x10d   :  { %1003 = vmatpush1.bf16.msra.mxu0 %v2902_v47 }
 0x10e   :  { %1004 = vmatprep.subr.bf16.mxu0 %v2907_v48 }
 0x111   :  { %1005 = vmatpush1.bf16.msra.mxu0 %v2905_v49  ;;  %v2978_v49 = vld [vmem:[#allocation8] ss:$8 sps:$4 sm:$0xff]  }
 0x112   :  { %1006 = vmatprep.subr.bf16.mxu0 %v2910_v50 }
 0x115   :  { %1007 = vmatpush1.bf16.msra.mxu0 %v2908_v51  ;;  %v2983_v51 = vld [vmem:[#allocation8 + $0x14] ss:$8 sps:$4 sm:$0xff]  }
 0x116   :  { %1008 = vmatprep.subr.bf16.mxu0 %v2913_v52  ;;  %v2981_v52 = vld [vmem:[#allocation8 + $0x10] ss:$8 sps:$4 sm:$0xff]  }
 0x119   :  { %1009 = vmatpush1.bf16.msra.mxu0 %v2911_v53  ;;  %v2986_v53 = vld [vmem:[#allocation8 + $0x24] ss:$8 sps:$4 sm:$0xff]  }
 0x11a   :  { %1019 = vmatprep.subr.bf16.mxu0 %v2916_v55  ;;  %v2989_v55 = vld [vmem:[#allocation8 + $0x34] ss:$8 sps:$4 sm:$0xff]  }
 0x11c   :  { %1011 = vmatmul.mubr.bf16.vlgmr.msra.gmra.mrb[0].mxu0 %v112_v57  ;;  %v2992_v57 = vld [vmem:[#allocation8 + $0x44] ss:$8 sps:$4 sm:$0xff]  }
 0x11d   :  { %1020 = vmatpush1.bf16.msra.mxu0 %v2914_v58  ;;  %1051 = vmatprep.mubr.bf16.mxu0 %v115_v59  ;;  %v2990_v58 = vld [vmem:[#allocation8 + $0x40] ss:$8 sps:$4 sm:$0xff]   ;;  %v2995_v59 = vld [vmem:[#allocation8 + $0x54] ss:$8 sps:$4 sm:$0xff]  }
 0x11e   :  { %1021 = vmatprep.subr.bf16.mxu0 %v2919_v60  ;;  %v2993_v60 = vld [vmem:[#allocation8 + $0x50] ss:$8 sps:$4 sm:$0xff]  }
 0x121   :  { %1022 = vmatpush1.bf16.msra.mxu0 %v2917_v61  ;;  %v2998_v61 = vld [vmem:[#allocation8 + $0x64] ss:$8 sps:$4 sm:$0xff]  }
 0x122   :  { %1023 = vmatprep.subr.bf16.mxu0 %v2922_v62  ;;  %v2996_v62 = vld [vmem:[#allocation8 + $0x60] ss:$8 sps:$4 sm:$0xff]  }
 0x125   :  { %1024 = vmatpush1.bf16.msra.mxu0 %v2920_v63  ;;  %v3001_v63 = vld [vmem:[#allocation8 + $0x74] ss:$8 sps:$4 sm:$0xff]  }
 0x126   :  { %1025 = vmatprep.subr.bf16.mxu0 %v2925_v0  ;;  %v2999_v0 = vld [vmem:[#allocation8 + $0x70] ss:$8 sps:$4 sm:$0xff]  }
 0x129   :  { %1026 = vmatpush1.bf16.msra.mxu0 %v2923_v1  ;;  %v3185_v1 = vmov 0  }
 0x12a   :  { %1027 = vmatprep.subr.bf16.mxu0 %v2928_v2  ;;  %v3310_v2 = vld [vmem:[#allocation10] sm:$0xff] }
 0x12d   :  { %1028 = vmatpush1.bf16.msra.mxu0 %v2926_v3  ;;  %v3312_v3 = vld [vmem:[#allocation10 + $0x20] sm:$0xff] }
 0x12e   :  { %1029 = vmatprep.subr.bf16.mxu0 %v2931_v4  ;;  %v2593_v4 = vcombine.low %v3310_v2, %v3312_v3 }
 0x131   :  { %1030 = vmatpush1.bf16.msra.mxu0 %v2929_v5  ;;  %v2594_v5 = vcombine.high %v3310_v2, %v3312_v3 }
 0x132   :  { %1031 = vmatprep.subr.bf16.mxu0 %v2934_v6  ;;  %v1396_v6 = vld [vmem:[#allocation10 + $0x18] sm:$0xff] }
 0x135   :  { %1032 = vmatpush1.bf16.msra.mxu0 %v2932_v7  ;;  %v1400_v7 = vld [vmem:[#allocation10 + $0x38] sm:$0xff] }
 0x136   :  { %1033 = vmatprep.subr.bf16.mxu0 %v2937_v8  ;;  %v2599_v8 = vcombine.low %v1396_v6, %v1400_v7 }
 0x139   :  { %1034 = vmatpush1.bf16.msra.mxu0 %v2935_v9  ;;  %v2600_v9 = vcombine.high %v1396_v6, %v1400_v7 }
 0x13a   :  { %1035 = vmatprep.subr.bf16.mxu0 %v2940_v10  ;;  %v1404_v10 = vld [vmem:[#allocation10 + $0x58] sm:$0xff] }
 0x13d   :  { %1036 = vmatpush1.bf16.msra.mxu0 %v2938_v11  ;;  %v1408_v11 = vld [vmem:[#allocation10 + $0x78] sm:$0xff] }
 0x13e   :  { %1037 = vmatprep.subr.bf16.mxu0 %v2943_v12  ;;  %v2607_v12 = vcombine.low %v1404_v10, %v1408_v11 }
 0x141   :  { %1038 = vmatpush1.bf16.msra.mxu0 %v2941_v13  ;;  %v2608_v13 = vcombine.high %v1404_v10, %v1408_v11  ;;  %v1401_v10 = vld [vmem:[#allocation10 + $0x40] sm:$0xff] }
 0x142   :  { %1039 = vmatprep.subr.bf16.mxu0 %v2946_v14  ;;  %v1412_v14 = vld [vmem:[#allocation10 + $0x98] sm:$0xff]  ;;  %v1405_v11 = vld [vmem:[#allocation10 + $0x60] sm:$0xff] }
 0x145   :  { %1040 = vmatpush1.bf16.msra.mxu0 %v2944_v15  ;;  %v1416_v15 = vld [vmem:[#allocation10 + $0xb8] sm:$0xff] }
 0x146   :  { %1041 = vmatprep.subr.bf16.mxu0 %v2949_v16  ;;  %v2615_v16 = vcombine.low %v1412_v14, %v1416_v15 }
 0x149   :  { %1042 = vmatpush1.bf16.msra.mxu0 %v2947_v17  ;;  %v2616_v17 = vcombine.high %v1412_v14, %v1416_v15  ;;  %v2602_v14 = vcombine.high %v1401_v10, %v1405_v11  ;;  %v1409_v15 = vld [vmem:[#allocation10 + $0x80] sm:$0xff] }
 0x14a   :  { %1043 = vmatprep.subr.bf16.mxu0 %v2952_v18  ;;  %v1420_v18 = vld [vmem:[#allocation10 + $0xd8] sm:$0xff] }
 0x14d   :  { %1044 = vmatpush1.bf16.msra.mxu0 %v2950_v19  ;;  %v1424_v19 = vld [vmem:[#allocation10 + $0xf8] sm:$0xff] }
 0x14e   :  { %1045 = vmatprep.subr.bf16.mxu0 %v2955_v20  ;;  %v2623_v20 = vcombine.low %v1420_v18, %v1424_v19 }
 0x151   :  { %1046 = vmatpush1.bf16.msra.mxu0 %v2953_v21  ;;  %v2624_v21 = vcombine.high %v1420_v18, %v1424_v19  ;;  %v1417_v19 = vld [vmem:[#allocation10 + $0xc0] sm:$0xff] }
 0x152   :  { %1047 = vmatprep.subr.bf16.mxu0 %v2958_v22  ;;  %v1428_v22 = vld [vmem:[#allocation10 + $0x118] sm:$0xff] }
 0x155   :  { %1048 = vmatpush1.bf16.msra.mxu0 %v2956_v23  ;;  %v1432_v23 = vld [vmem:[#allocation10 + $0x138] sm:$0xff] }
 0x156   :  { %1049 = vmatprep.subr.bf16.mxu0 %v2961_v24  ;;  %v2631_v24 = vcombine.low %v1428_v22, %v1432_v23 }
 0x159   :  { %1050 = vmatpush1.bf16.msra.mxu0 %v2959_v25  ;;  %v2632_v25 = vcombine.high %v1428_v22, %v1432_v23  ;;  %v1425_v23 = vld [vmem:[#allocation10 + $0x100] sm:$0xff] }
 0x15a   :  { %2326 = vmatprep.subr.bf16.mxu0 %v2600_v9 }
 0x15c   :  { %1052 = vmatmul.mubr.bf16.vlgmr.msra.gmra.mrb[0].mxu0 %v114_v27  ;;  %v1440_v27 = vld [vmem:[#allocation10 + $0x178] sm:$0xff] }
 0x15d   :  { %2327 = vmatpush1.bf16.msra.mxu0 %v2599_v8  ;;  %v2639_v28 = vcombine.low %v1436_v26, %v1440_v27  ;;  %v2640_v29 = vcombine.high %v1436_v26, %v1440_v27  ;;  %v1433_v27 = vld [vmem:[#allocation10 + $0x140] sm:$0xff] }
 0x15e   :  { %2328 = vmatprep.subr.bf16.mxu0 %v2608_v13 }
 0x161   :  { %2329 = vmatpush1.bf16.msra.mxu0 %v2607_v12 }
 0x162   :  { %2330 = vmatprep.subr.bf16.mxu0 %v2616_v17  ;;  %v2601_v17 = vcombine.low %v1401_v10, %v1405_v11  ;;  %v1513_v11 = vld [vmem:[#allocation10 + $0x3c0] sm:$0xff] }
 0x165   :  { %2331 = vmatpush1.bf16.msra.mxu0 %v2615_v16  ;;  %v1413_v16 = vld [vmem:[#allocation10 + $0xa0] sm:$0xff] }
 0x166   :  { %2332 = vmatprep.subr.bf16.mxu0 %v2624_v21  ;;  %v2610_v18 = vcombine.high %v1409_v15, %v1413_v16  ;;  %v2609_v21 = vcombine.low %v1409_v15, %v1413_v16  ;;  %v1520_v15 = vld [vmem:[#allocation10 + $0x3f8] sm:$0xff] }
 0x169   :  { %2333 = vmatpush1.bf16.msra.mxu0 %v2623_v20  ;;  %v1421_v20 = vld [vmem:[#allocation10 + $0xe0] sm:$0xff] }
 0x16a   :  { %2334 = vmatprep.subr.bf16.mxu0 %v2632_v25  ;;  %v2618_v22 = vcombine.high %v1417_v19, %v1421_v20  ;;  %v2617_v25 = vcombine.low %v1417_v19, %v1421_v20  ;;  %v1394_v19 = vld [vmem:[#allocation10 + $0x8] sm:$0xff] }
 0x16b   :  { %v1398_v20 = vld [vmem:[#allocation10 + $0x28] sm:$0xff] }
 0x16d   :  { %2335 = vmatpush1.bf16.msra.mxu0 %v2631_v24  ;;  %v1429_v24 = vld [vmem:[#allocation10 + $0x120] sm:$0xff] }
 0x16e   :  { %2336 = vmatprep.subr.bf16.mxu0 %v2640_v29  ;;  %v2626_v26 = vcombine.high %v1425_v23, %v1429_v24  ;;  %v2625_v2 = vcombine.low %v1425_v23, %v1429_v24  ;;  %v1445_v29 = vld [vmem:[#allocation10 + $0x1a0] sm:$0xff] }
 0x16f   :  { %v1256_v23 = vld [vmem:[%s3380_s6] sm:$0x3] }
 0x170   :  { %v1261_v24 = vrot.slane %v1256_v23, %v3300_v35 }
 0x171   :  { %2337 = vmatpush1.bf16.msra.mxu0 %v2639_v28  ;;  %v1437_v28 = vld [vmem:[#allocation10 + $0x160] sm:$0xff] }
 0x172   :  { %2338 = vmatprep.subr.bf16.mxu0 %v2648_v33  ;;  %v2634_v3 = vcombine.high %v1433_v27, %v1437_v28  ;;  %v2633_v30 = vcombine.low %v1433_v27, %v1437_v28  ;;  %v1453_v33 = vld [vmem:[#allocation10 + $0x1e0] sm:$0xff] }
 0x175   :  { %2339 = vmatpush1.bf16.msra.mxu0 %v2647_v32  ;;  %v1449_v32 = vld [vmem:[#allocation10 + $0x1c0] sm:$0xff] }
 0x22f   :  { %v1053_v40 = vpop.f32.mrb[0].mxu0 }
 0x230   :  { %v2743_v41 = vadd.f32 %v1053_v40, %v249_v38  ;;  %v1055_v42 = vpop.f32.mrb[1].mxu0  ;;  %v1456_v38 = vld [vmem:[#allocation10 + $0x1f8] sm:$0xff] }
 0x231   :  { %v2744_v43 = vadd.f32 %v1055_v42, %v253_v39  ;;  %v1057_v44 = vpop.f32.mrb[2].mxu0  ;;  %v2655_v39 = vcombine.low %v1452_v36, %v1456_v38  ;;  %v2656_v40 = vcombine.high %v1452_v36, %v1456_v38  ;;  %v1464_v42 = vld [vmem:[#allocation10 + $0x238] sm:$0xff]  ;;  %v2650_v38 = vcombine.high %v1449_v32, %v1453_v33 }
 0x232   :  { %v1060_v45 = vmax.f32 %v2743_v41, 0.0  ;;  %v1058_v46 = vpop.f32.mrb[3].mxu0  ;;  %v1460_v41 = vld [vmem:[#allocation10 + $0x218] sm:$0xff] }
 0x233   :  { %v1061_v47 = vmax.f32 %v2744_v43, 0.0  ;;  %2340 = vmatprep.subr.bf16.mxu0 %v2656_v40  ;;  %v2663_v43 = vcombine.low %v1460_v41, %v1464_v42  ;;  %v2664_v44 = vcombine.high %v1460_v41, %v1464_v42  ;;  %v1472_v46 = vld [vmem:[#allocation10 + $0x278] sm:$0xff]  ;;  %v1461_v40 = vld [vmem:[#allocation10 + $0x220] sm:$0xff]  ;;  %v2649_v41 = vcombine.low %v1449_v32, %v1453_v33  ;;  %v1406_v32 = vld [vmem:[#allocation10 + $0x68] sm:$0xff] }
 0x234   :  { %v1062_v50 = vpack.c.bf16 %v1060_v45, %v1060_v45  ;;  %2341 = vmatpush1.bf16.msra.mxu0 %v2655_v39  ;;  %v1468_v45 = vld [vmem:[#allocation10 + $0x258] sm:$0xff]  ;;  %v1457_v39 = vld [vmem:[#allocation10 + $0x200] sm:$0xff] }
 0x235   :  { %v1063_v48 = vpack.c.bf16 %v1061_v47, %v1061_v47  ;;  %2342 = vmatprep.subr.bf16.mxu0 %v2664_v44  ;;  %v2671_v47 = vcombine.low %v1468_v45, %v1472_v46  ;;  %v2658_v42 = vcombine.high %v1457_v39, %v1461_v40  ;;  %v1469_v44 = vld [vmem:[#allocation10 + $0x260] sm:$0xff] }
 0x237   :  { %1231 = vmatprep.mubr.bf16.mxu1 %v1063_v48  ;;  %v2672_v48 = vcombine.high %v1468_v45, %v1472_v46  ;;  %v2657_v45 = vcombine.low %v1457_v39, %v1461_v40  ;;  %v1410_v39 = vld [vmem:[#allocation10 + $0x88] sm:$0xff] }
 0x238   :  { %1232 = vmatmul.mubr.bf16.vlgmr.msra.gmra.mrb[0].mxu1 %v1062_v50  ;;  %2343 = vmatpush1.bf16.msra.mxu0 %v2663_v43  ;;  %v1480_v50 = vld [vmem:[#allocation10 + $0x2b8] sm:$0xff]  ;;  %v1465_v43 = vld [vmem:[#allocation10 + $0x240] sm:$0xff]  ;;  %v1414_v40 = vld [vmem:[#allocation10 + $0xa8] sm:$0xff] }
 0x239   :  { %1349 = vmatpush1.bf16.msra.mxu1 %v2978_v49  ;;  %1380 = vmatprep.mubr.bf16.mxu1 %v3185_v1  ;;  %v1476_v49 = vld [vmem:[#allocation10 + $0x298] sm:$0xff]  ;;  %v2666_v46 = vcombine.high %v1465_v43, %v1469_v44 }
 0x23a   :  { %1350 = vmatprep.subr.bf16.mxu1 %v2983_v51  ;;  %2344 = vmatprep.subr.bf16.mxu0 %v2672_v48  ;;  %v2679_v51 = vcombine.low %v1476_v49, %v1480_v50  ;;  %v1477_v48 = vld [vmem:[#allocation10 + $0x2a0] sm:$0xff] }
 0x23c   :  { %2345 = vmatpush1.bf16.msra.mxu0 %v2671_v47  ;;  %v1473_v47 = vld [vmem:[#allocation10 + $0x280] sm:$0xff] }
 0x23d   :  { %1351 = vmatpush1.bf16.msra.mxu1 %v2981_v52  ;;  %v2680_v52 = vcombine.high %v1476_v49, %v1480_v50  ;;  %v2665_v49 = vcombine.low %v1465_v43, %v1469_v44  ;;  %v2674_v50 = vcombine.high %v1473_v47, %v1477_v48  ;;  %v1418_v43 = vld [vmem:[#allocation10 + $0xc8] sm:$0xff] }
 0x23e   :  { %1352 = vmatprep.subr.bf16.mxu1 %v2986_v53  ;;  %v1484_v53 = vld [vmem:[#allocation10 + $0x2d8] sm:$0xff]  ;;  %v1422_v44 = vld [vmem:[#allocation10 + $0xe8] sm:$0xff] }
 0x23f   :  { %2346 = vmatprep.subr.bf16.mxu0 %v2680_v52  ;;  %v1485_v52 = vld [vmem:[#allocation10 + $0x2e0] sm:$0xff] }
 0x240   :  { %2347 = vmatpush1.bf16.msra.mxu0 %v2679_v51  ;;  %v1481_v51 = vld [vmem:[#allocation10 + $0x2c0] sm:$0xff] }
 0x241   :  { %1353 = vmatpush1.bf16.msra.mxu1 %v2984_v54  ;;  %v1488_v54 = vld [vmem:[#allocation10 + $0x2f8] sm:$0xff] }
 0x242   :  { %1354 = vmatprep.subr.bf16.mxu1 %v2989_v55  ;;  %v2687_v55 = vcombine.low %v1484_v53, %v1488_v54 }
 0x245   :  { %1355 = vmatpush1.bf16.msra.mxu1 %v2987_v56  ;;  %v2688_v56 = vcombine.high %v1484_v53, %v1488_v54  ;;  %v2673_v53 = vcombine.low %v1473_v47, %v1477_v48  ;;  %v2682_v54 = vcombine.high %v1481_v51, %v1485_v52  ;;  %v1426_v47 = vld [vmem:[#allocation10 + $0x108] sm:$0xff] }
 0x246   :  { %1356 = vmatprep.subr.bf16.mxu1 %v2992_v57  ;;  %v1492_v57 = vld [vmem:[#allocation10 + $0x318] sm:$0xff]  ;;  %v1430_v48 = vld [vmem:[#allocation10 + $0x128] sm:$0xff] }
 0x247   :  { %2348 = vmatprep.subr.bf16.mxu0 %v2688_v56  ;;  %v1493_v56 = vld [vmem:[#allocation10 + $0x320] sm:$0xff] }
 0x248   :  { %2349 = vmatpush1.bf16.msra.mxu0 %v2687_v55  ;;  %v1489_v55 = vld [vmem:[#allocation10 + $0x300] sm:$0xff] }
 0x249   :  { %1357 = vmatpush1.bf16.msra.mxu1 %v2990_v58  ;;  %v1496_v58 = vld [vmem:[#allocation10 + $0x338] sm:$0xff] }
 0x24a   :  { %1358 = vmatprep.subr.bf16.mxu1 %v2995_v59  ;;  %v2695_v59 = vcombine.low %v1492_v57, %v1496_v58 }
 0x24d   :  { %1359 = vmatpush1.bf16.msra.mxu1 %v2993_v60  ;;  %v2696_v60 = vcombine.high %v1492_v57, %v1496_v58  ;;  %v2681_v57 = vcombine.low %v1481_v51, %v1485_v52  ;;  %v2690_v58 = vcombine.high %v1489_v55, %v1493_v56  ;;  %v1434_v51 = vld [vmem:[#allocation10 + $0x148] sm:$0xff] }
 0x24e   :  { %1360 = vmatprep.subr.bf16.mxu1 %v2998_v61  ;;  %v1500_v61 = vld [vmem:[#allocation10 + $0x358] sm:$0xff]  ;;  %v1438_v52 = vld [vmem:[#allocation10 + $0x168] sm:$0xff] }
 0x24f   :  { %2350 = vmatprep.subr.bf16.mxu0 %v2696_v60  ;;  %v1501_v60 = vld [vmem:[#allocation10 + $0x360] sm:$0xff] }
 0x250   :  { %2351 = vmatpush1.bf16.msra.mxu0 %v2695_v59  ;;  %v1497_v59 = vld [vmem:[#allocation10 + $0x340] sm:$0xff] }
 0x251   :  { %1361 = vmatpush1.bf16.msra.mxu1 %v2996_v62  ;;  %v1504_v62 = vld [vmem:[#allocation10 + $0x378] sm:$0xff] }
 0x252   :  { %1362 = vmatprep.subr.bf16.mxu1 %v3001_v63  ;;  %v2703_v63 = vcombine.low %v1500_v61, %v1504_v62 }
 0x255   :  { %1363 = vmatpush1.bf16.msra.mxu1 %v2999_v0  ;;  %v2704_v0 = vcombine.high %v1500_v61, %v1504_v62  ;;  %v2689_v61 = vcombine.low %v1489_v55, %v1493_v56  ;;  %v2698_v62 = vcombine.high %v1497_v59, %v1501_v60  ;;  %v1442_v55 = vld [vmem:[#allocation10 + $0x188] sm:$0xff] }
 0x256   :  { %2203 = vmatprep.subr.bf16.mxu1 %v2594_v5  ;;  %v2560_v5 = vld [vmem:[%s3378_s4] ss:$0 sm:$0xff]  ;;  %v1446_v56 = vld [vmem:[#allocation10 + $0x1a8] sm:$0xff] }
 0x257   :  { %2352 = vmatprep.subr.bf16.mxu0 %v2704_v0  ;;  %v1505_v0 = vld [vmem:[#allocation10 + $0x380] sm:$0xff] }
 0x258   :  { %2353 = vmatpush1.bf16.msra.mxu0 %v2703_v63  ;;  %v2697_v63 = vcombine.low %v1497_v59, %v1501_v60  ;;  %v1450_v59 = vld [vmem:[#allocation10 + $0x1c8] sm:$0xff] }
 0x259   :  { %v1454_v60 = vld [vmem:[#allocation10 + $0x1e8] sm:$0xff] }
 0x30b   :  { %v2737_v1 = vpop.f32.mrb[0].mxu1 }
 0x30c   :  { %v2738_v6 = vpop.f32.mrb[1].mxu1 }
 0x30d   :  { %v2739_v7 = vadd.f32 %v2738_v6, %v2737_v1  ;;  %v2740_v8 = vpop.f32.mrb[2].mxu1  ;;  %v1509_v1 = vld [vmem:[#allocation10 + $0x3a0] sm:$0xff]  ;;  %v1508_v6 = vld [vmem:[#allocation10 + $0x398] sm:$0xff] }
 0x30e   :  { %v2741_v9 = vpop.f32.mrb[3].mxu1  ;;  %v2705_v8 = vcombine.low %v1505_v0, %v1509_v1 }
 0x30f   :  { %v1234_v12 = vadd.f32 %v2739_v7, %v2560_v5  ;;  %v2706_v5 = vcombine.high %v1505_v0, %v1509_v1  ;;  %v1512_v7 = vld [vmem:[#allocation10 + $0x3b8] sm:$0xff]  ;;  %v1462_v0 = vld [vmem:[#allocation10 + $0x228] sm:$0xff]  ;;  %v2651_v1 = vcombine.low %v1450_v59, %v1454_v60 }
 0x310   :  { %v2712_v9 = vcombine.high %v1508_v6, %v1512_v7  ;;  %v2711_v10 = vcombine.low %v1508_v6, %v1512_v7  ;;  %v1466_v6 = vld [vmem:[#allocation10 + $0x248] sm:$0xff] }
 0x311   :  { %v1239_v13 = vpack.c.bf16 %v1234_v12, %v1234_v12  ;;  %v1517_v12 = vld [vmem:[#allocation10 + $0x3e0] sm:$0xff]  ;;  %v1470_v7 = vld [vmem:[#allocation10 + $0x268] sm:$0xff] }
 0x312   :  { %2354 = vmatprep.subr.bf16.mxu0 %v2712_v9  ;;  %v2713_v16 = vcombine.low %v1513_v11, %v1517_v12  ;;  %v2668_v9 = vcombine.high %v1466_v6, %v1470_v7 }
 0x313   :  { %1381 = vmatmul.mubr.bf16.vlgmr.msra.gmra.mrb[4].mxu1 %v1239_v13  ;;  %2355 = vmatpush1.bf16.msra.mxu0 %v2711_v10  ;;  %v2714_v13 = vcombine.high %v1513_v11, %v1517_v12  ;;  %v1474_v10 = vld [vmem:[#allocation10 + $0x288] sm:$0xff]  ;;  %v2667_v12 = vcombine.low %v1466_v6, %v1470_v7  ;;  %v1459_v6 = vld [vmem:[#allocation10 + $0x210] sm:$0xff] }
 0x314   :  { %2204 = vmatpush1.bf16.msra.mxu1 %v2593_v4  ;;  %v1441_v4 = vld [vmem:[#allocation10 + $0x180] sm:$0xff]  ;;  %v1478_v11 = vld [vmem:[#allocation10 + $0x2a8] sm:$0xff]  ;;  %v1463_v7 = vld [vmem:[#allocation10 + $0x230] sm:$0xff] }
 0x315   :  { %2205 = vmatprep.subr.bf16.mxu1 %v2602_v14  ;;  %v2642_v31 = vcombine.high %v1441_v4, %v1445_v29  ;;  %v2641_v36 = vcombine.low %v1441_v4, %v1445_v29  ;;  %v1516_v14 = vld [vmem:[#allocation10 + $0x3d8] sm:$0xff] }
 0x318   :  { %2206 = vmatpush1.bf16.msra.mxu1 %v2601_v17  ;;  %v2720_v17 = vcombine.high %v1516_v14, %v1520_v15 }
 0x319   :  { %2207 = vmatprep.subr.bf16.mxu1 %v2610_v18  ;;  %v2719_v18 = vcombine.low %v1516_v14, %v1520_v15  ;;  %v1482_v14 = vld [vmem:[#allocation10 + $0x2c8] sm:$0xff] }
 0x31a   :  { %2356 = vmatprep.subr.bf16.mxu0 %v2720_v17  ;;  %v1486_v15 = vld [vmem:[#allocation10 + $0x2e8] sm:$0xff] }
 0x31b   :  { %2357 = vmatpush1.bf16.msra.mxu0 %v2719_v18  ;;  %v2684_v17 = vcombine.high %v1482_v14, %v1486_v15  ;;  %v1490_v18 = vld [vmem:[#allocation10 + $0x308] sm:$0xff] }
 0x31c   :  { %2208 = vmatpush1.bf16.msra.mxu1 %v2609_v21  ;;  %v2596_v21 = vcombine.high %v1394_v19, %v1398_v20 }
 0x31d   :  { %2209 = vmatprep.subr.bf16.mxu1 %v2618_v22  ;;  %v2595_v22 = vcombine.low %v1394_v19, %v1398_v20  ;;  %v1494_v19 = vld [vmem:[#allocation10 + $0x328] sm:$0xff]  ;;  %v2683_v20 = vcombine.low %v1482_v14, %v1486_v15  ;;  %v1475_v14 = vld [vmem:[#allocation10 + $0x290] sm:$0xff] }
 0x31e   :  { %v1479_v15 = vld [vmem:[#allocation10 + $0x2b0] sm:$0xff] }
 0x320   :  { %2210 = vmatpush1.bf16.msra.mxu1 %v2617_v25  ;;  %v1265_v25 = vrot.slane %v1256_v23, %v3306_v37  ;;  %v1502_v23 = vld [vmem:[#allocation10 + $0x368] sm:$0xff] }
 0x321   :  { %2211 = vmatprep.subr.bf16.mxu1 %v2626_v26 }
 0x324   :  { %2212 = vmatpush1.bf16.msra.mxu1 %v2625_v2 }
 0x325   :  { %2213 = vmatprep.subr.bf16.mxu1 %v2634_v3 }
 0x328   :  { %2214 = vmatpush1.bf16.msra.mxu1 %v2633_v30 }
 0x329   :  { %2215 = vmatprep.subr.bf16.mxu1 %v2642_v31  ;;  %v1402_v31 = vld [vmem:[#allocation10 + $0x48] sm:$0xff] }
 0x32c   :  { %2216 = vmatpush1.bf16.msra.mxu1 %v2641_v36 }
 0x32d   :  { %2217 = vmatprep.subr.bf16.mxu1 %v2650_v38  ;;  %v2604_v38 = vcombine.high %v1402_v31, %v1406_v32 }
 0x330   :  { %2218 = vmatpush1.bf16.msra.mxu1 %v2649_v41  ;;  %v2603_v41 = vcombine.low %v1402_v31, %v1406_v32  ;;  %v1395_v31 = vld [vmem:[#allocation10 + $0x10] sm:$0xff] }
 0x331   :  { %2219 = vmatprep.subr.bf16.mxu1 %v2658_v42  ;;  %v2612_v42 = vcombine.high %v1410_v39, %v1414_v40  ;;  %v1399_v32 = vld [vmem:[#allocation10 + $0x30] sm:$0xff] }
 0x334   :  { %2220 = vmatpush1.bf16.msra.mxu1 %v2657_v45  ;;  %v2611_v45 = vcombine.low %v1410_v39, %v1414_v40  ;;  %v2598_v39 = vcombine.high %v1395_v31, %v1399_v32  ;;  %v1403_v40 = vld [vmem:[#allocation10 + $0x50] sm:$0xff] }
 0x335   :  { %2221 = vmatprep.subr.bf16.mxu1 %v2666_v46  ;;  %v2620_v46 = vcombine.high %v1418_v43, %v1422_v44 }
 0x338   :  { %2222 = vmatpush1.bf16.msra.mxu1 %v2665_v49  ;;  %v2619_v49 = vcombine.low %v1418_v43, %v1422_v44  ;;  %v1411_v44 = vld [vmem:[#allocation10 + $0x90] sm:$0xff] }
 0x339   :  { %2223 = vmatprep.subr.bf16.mxu1 %v2674_v50  ;;  %v2628_v50 = vcombine.high %v1426_v47, %v1430_v48 }
 0x33c   :  { %2224 = vmatpush1.bf16.msra.mxu1 %v2673_v53  ;;  %v2627_v53 = vcombine.low %v1426_v47, %v1430_v48  ;;  %v1419_v48 = vld [vmem:[#allocation10 + $0xd0] sm:$0xff] }
 0x33d   :  { %2225 = vmatprep.subr.bf16.mxu1 %v2682_v54  ;;  %v2636_v54 = vcombine.high %v1434_v51, %v1438_v52 }
 0x340   :  { %2226 = vmatpush1.bf16.msra.mxu1 %v2681_v57  ;;  %v2635_v57 = vcombine.low %v1434_v51, %v1438_v52  ;;  %v1427_v52 = vld [vmem:[#allocation10 + $0x110] sm:$0xff] }
 0x341   :  { %2227 = vmatprep.subr.bf16.mxu1 %v2690_v58  ;;  %v2644_v58 = vcombine.high %v1442_v55, %v1446_v56 }
 0x344   :  { %2228 = vmatpush1.bf16.msra.mxu1 %v2689_v61  ;;  %v2643_v61 = vcombine.low %v1442_v55, %v1446_v56  ;;  %v1435_v56 = vld [vmem:[#allocation10 + $0x150] sm:$0xff] }
 0x345   :  { %2229 = vmatprep.subr.bf16.mxu1 %v2698_v62  ;;  %v2652_v62 = vcombine.high %v1450_v59, %v1454_v60  ;;  %v1443_v59 = vld [vmem:[#allocation10 + $0x190] sm:$0xff] }
 0x346   :  { %v1447_v60 = vld [vmem:[#allocation10 + $0x1b0] sm:$0xff] }
 0x348   :  { %2230 = vmatpush1.bf16.msra.mxu1 %v2697_v63  ;;  %v1458_v63 = vld [vmem:[#allocation10 + $0x208] sm:$0xff] }
 0x349   :  { %2231 = vmatprep.subr.bf16.mxu1 %v2706_v5  ;;  %v2660_v5 = vcombine.high %v1458_v63, %v1462_v0 }
 0x34c   :  { %2232 = vmatpush1.bf16.msra.mxu1 %v2705_v8  ;;  %v2659_v8 = vcombine.low %v1458_v63, %v1462_v0  ;;  %v1451_v63 = vld [vmem:[#allocation10 + $0x1d0] sm:$0xff] }
 0x34d   :  { %2233 = vmatprep.subr.bf16.mxu1 %v2714_v13  ;;  %v2676_v13 = vcombine.high %v1474_v10, %v1478_v11  ;;  %v1455_v0 = vld [vmem:[#allocation10 + $0x1f0] sm:$0xff] }
 0x350   :  { %2234 = vmatpush1.bf16.msra.mxu1 %v2713_v16  ;;  %v2675_v16 = vcombine.low %v1474_v10, %v1478_v11  ;;  %v1467_v10 = vld [vmem:[#allocation10 + $0x250] sm:$0xff] }
 0x351   :  { %2244 = vmatprep.subr.bf16.mxu1 %v2596_v21  ;;  %v2692_v21 = vcombine.high %v1490_v18, %v1494_v19  ;;  %v1471_v11 = vld [vmem:[#allocation10 + $0x270] sm:$0xff] }
 0x3e6   :  { %v1382_v26 = vpop.f32.mrb[4].mxu1 }
 0x3e7   :  { %v1383_v27 = vadd.f32 %v1382_v26, %v1261_v24  ;;  %v1384_v28 = vpop.f32.mrb[5].mxu1  ;;  %v2691_v24 = vcombine.low %v1490_v18, %v1494_v19  ;;  %v1506_v26 = vld [vmem:[#allocation10 + $0x388] sm:$0xff]  ;;  %v1483_v18 = vld [vmem:[#allocation10 + $0x2d0] sm:$0xff] }
 0x3e8   :  { %v1385_v2 = vadd.f32 %v1384_v28, %v1265_v25  ;;  %v1386_v3 = vpop.f32.mrb[6].mxu1  ;;  %v1487_v19 = vld [vmem:[#allocation10 + $0x2f0] sm:$0xff] }
 0x3e9   :  { %v1389_v4 = vmax.f32 %v1383_v27, 0.0  ;;  %v1387_v29 = vpop.f32.mrb[7].mxu1  ;;  %v1510_v27 = vld [vmem:[#allocation10 + $0x3a8] sm:$0xff] }
 0x3ea   :  { %v1390_v30 = vmax.f32 %v1385_v2, 0.0  ;;  %v2708_v2 = vcombine.high %v1506_v26, %v1510_v27  ;;  %v1514_v3 = vld [vmem:[#allocation10 + $0x3c8] sm:$0xff]  ;;  %v2707_v29 = vcombine.low %v1506_v26, %v1510_v27  ;;  %v1499_v26 = vld [vmem:[#allocation10 + $0x350] sm:$0xff] }
 0x3eb   :  { %v3331_v36 = vpack.c.bf16 %v1389_v4, %v1389_v4  ;;  %v1518_v4 = vld [vmem:[#allocation10 + $0x3e8] sm:$0xff]  ;;  %v1503_v27 = vld [vmem:[#allocation10 + $0x370] sm:$0xff] }
 0x3ec   :  { %v3329_v33 = vpack.c.bf16 %v1390_v30, %v1390_v30  ;;  %v2716_v30 = vcombine.high %v1514_v3, %v1518_v4 }
 0x3ee   :  { %2235 = vmatprep.mubr.bf16.mxu1 %v3329_v33  ;;  %2358 = vmatprep.mubr.bf16.mxu0 %v3329_v33 }
 0x3ef   :  { %2236 = vmatmul.mubr.bf16.vlgmr.msra.gmra.mrb[8].mxu1 %v3331_v36  ;;  %2359 = vmatmul.mubr.bf16.vlgmr.msra.gmra.mrb[4].mxu0 %v3331_v36 }
 0x3f0   :  { %2245 = vmatpush1.bf16.msra.mxu1 %v2595_v22  ;;  %2276 = vmatprep.mubr.bf16.mxu1 %v3329_v33  ;;  %v1498_v22 = vld [vmem:[#allocation10 + $0x348] sm:$0xff] }
 0x3f1   :  { %2246 = vmatprep.subr.bf16.mxu1 %v2604_v38  ;;  %v2700_v25 = vcombine.high %v1498_v22, %v1502_v23  ;;  %v2699_v28 = vcombine.low %v1498_v22, %v1502_v23  ;;  %v2715_v38 = vcombine.low %v1514_v3, %v1518_v4  ;;  %v1491_v22 = vld [vmem:[#allocation10 + $0x310] sm:$0xff] }
 0x3f2   :  { %v1495_v23 = vld [vmem:[#allocation10 + $0x330] sm:$0xff] }
 0x3f3   :  { %v1507_v3 = vld [vmem:[#allocation10 + $0x390] sm:$0xff] }
 0x3f4   :  { %2247 = vmatpush1.bf16.msra.mxu1 %v2603_v41  ;;  %v1407_v41 = vld [vmem:[#allocation10 + $0x70] sm:$0xff] }
 0x3f5   :  { %2248 = vmatprep.subr.bf16.mxu1 %v2612_v42  ;;  %v2597_v42 = vcombine.low %v1395_v31, %v1399_v32  ;;  %v2606_v43 = vcombine.high %v1403_v40, %v1407_v41  ;;  %v1511_v4 = vld [vmem:[#allocation10 + $0x3b0] sm:$0xff] }
 0x3f6   :  { %v1515_v31 = vld [vmem:[#allocation10 + $0x3d0] sm:$0xff] }
 0x3f7   :  { %v1519_v32 = vld [vmem:[#allocation10 + $0x3f0] sm:$0xff] }
 0x3f8   :  { %2249 = vmatpush1.bf16.msra.mxu1 %v2611_v45  ;;  %v1415_v45 = vld [vmem:[#allocation10 + $0xb0] sm:$0xff] }
 0x3f9   :  { %2250 = vmatprep.subr.bf16.mxu1 %v2620_v46  ;;  %v2605_v46 = vcombine.low %v1403_v40, %v1407_v41  ;;  %v2614_v47 = vcombine.high %v1411_v44, %v1415_v45  ;;  %v2717_v40 = vcombine.low %v1515_v31, %v1519_v32  ;;  %v1549_v41 = vsub.s32 6, %v3297_v34 }
 0x3fc   :  { %2251 = vmatpush1.bf16.msra.mxu1 %v2619_v49  ;;  %v1423_v49 = vld [vmem:[#allocation10 + $0xf0] sm:$0xff] }
 0x3fd   :  { %2252 = vmatprep.subr.bf16.mxu1 %v2628_v50  ;;  %v2613_v50 = vcombine.low %v1411_v44, %v1415_v45  ;;  %v2622_v51 = vcombine.high %v1419_v48, %v1423_v49 }
 0x400   :  { %2253 = vmatpush1.bf16.msra.mxu1 %v2627_v53  ;;  %v1431_v53 = vld [vmem:[#allocation10 + $0x130] sm:$0xff] }
 0x401   :  { %2254 = vmatprep.subr.bf16.mxu1 %v2636_v54  ;;  %v2621_v54 = vcombine.low %v1419_v48, %v1423_v49  ;;  %v2630_v55 = vcombine.high %v1427_v52, %v1431_v53 }
 0x404   :  { %2255 = vmatpush1.bf16.msra.mxu1 %v2635_v57  ;;  %v1439_v57 = vld [vmem:[#allocation10 + $0x170] sm:$0xff] }
 0x405   :  { %2256 = vmatprep.subr.bf16.mxu1 %v2644_v58  ;;  %v2629_v58 = vcombine.low %v1427_v52, %v1431_v53 }
 0x408   :  { %2257 = vmatpush1.bf16.msra.mxu1 %v2643_v61  ;;  %v2637_v61 = vcombine.low %v1435_v56, %v1439_v57 }
 0x409   :  { %2258 = vmatprep.subr.bf16.mxu1 %v2652_v62  ;;  %v2646_v62 = vcombine.high %v1443_v59, %v1447_v60 }
 0x40c   :  { %2259 = vmatpush1.bf16.msra.mxu1 %v2651_v1  ;;  %v2645_v1 = vcombine.low %v1443_v59, %v1447_v60 }
 0x40d   :  { %2260 = vmatprep.subr.bf16.mxu1 %v2660_v5  ;;  %v2654_v5 = vcombine.high %v1451_v63, %v1455_v0 }
 0x410   :  { %2261 = vmatpush1.bf16.msra.mxu1 %v2659_v8  ;;  %v2653_v8 = vcombine.low %v1451_v63, %v1455_v0 }
 0x411   :  { %2262 = vmatprep.subr.bf16.mxu1 %v2668_v9  ;;  %v2662_v9 = vcombine.high %v1459_v6, %v1463_v7 }
 0x414   :  { %2263 = vmatpush1.bf16.msra.mxu1 %v2667_v12  ;;  %v2661_v12 = vcombine.low %v1459_v6, %v1463_v7 }
 0x415   :  { %2264 = vmatprep.subr.bf16.mxu1 %v2676_v13  ;;  %v2670_v13 = vcombine.high %v1467_v10, %v1471_v11 }
 0x418   :  { %2265 = vmatpush1.bf16.msra.mxu1 %v2675_v16  ;;  %v2669_v16 = vcombine.low %v1467_v10, %v1471_v11 }
 0x419   :  { %2266 = vmatprep.subr.bf16.mxu1 %v2684_v17  ;;  %v2678_v17 = vcombine.high %v1475_v14, %v1479_v15 }
 0x41c   :  { %2267 = vmatpush1.bf16.msra.mxu1 %v2683_v20  ;;  %v2677_v20 = vcombine.low %v1475_v14, %v1479_v15  ;;  %v1533_v15 = vsub.s32 2, %v3297_v34 }
 0x41d   :  { %2268 = vmatprep.subr.bf16.mxu1 %v2692_v21  ;;  %v2686_v21 = vcombine.high %v1483_v18, %v1487_v19 }
 0x420   :  { %2269 = vmatpush1.bf16.msra.mxu1 %v2691_v24  ;;  %v2685_v24 = vcombine.low %v1483_v18, %v1487_v19 }
 0x421   :  { %2270 = vmatprep.subr.bf16.mxu1 %v2700_v25  ;;  %v2694_v25 = vcombine.high %v1491_v22, %v1495_v23 }
 0x424   :  { %2271 = vmatpush1.bf16.msra.mxu1 %v2699_v28  ;;  %v2693_v28 = vcombine.low %v1491_v22, %v1495_v23 }
 0x425   :  { %2272 = vmatprep.subr.bf16.mxu1 %v2708_v2  ;;  %v2702_v2 = vcombine.high %v1499_v26, %v1503_v27 }
 0x428   :  { %2273 = vmatpush1.bf16.msra.mxu1 %v2707_v29  ;;  %v2701_v29 = vcombine.low %v1499_v26, %v1503_v27 }
 0x429   :  { %2274 = vmatprep.subr.bf16.mxu1 %v2716_v30  ;;  %v2710_v30 = vcombine.high %v1507_v3, %v1511_v4 }
 0x42c   :  { %2275 = vmatpush1.bf16.msra.mxu1 %v2715_v38  ;;  %v2709_v38 = vcombine.low %v1507_v3, %v1511_v4 }
 0x42d   :  { %2285 = vmatprep.subr.bf16.mxu1 %v2598_v39  ;;  %v2718_v39 = vcombine.high %v1515_v31, %v1519_v32  ;;  %v1541_v32 = vsub.s32 4, %v3297_v34 }
 0x42f   :  { %2277 = vmatmul.mubr.bf16.vlgmr.msra.gmra.mrb[12].mxu1 %v3331_v36 }
 0x430   :  { %2286 = vmatpush1.bf16.msra.mxu1 %v2597_v42  ;;  %2317 = vmatprep.mubr.bf16.mxu1 %v3329_v33  ;;  %v2638_v33 = vcombine.high %v1435_v56, %v1439_v57  ;;  %v3345_v42 = vld [vmem:[%s3382_s8] sm:$0xff]  ;;  %s3186_s8 = smov [#allocation11]  }
 0x431   :  { %2287 = vmatprep.subr.bf16.mxu1 %v2606_v43  ;;  %v1553_v43 = vsub.s32 7, %v3297_v34  ;;  %v1526_v44 = vrot.slane %v3345_v42, %v3300_v35  ;;  %v1550_v45 = vrot.slane %v3345_v42, %v1549_v41  ;;  %s2421_s12 = sshll.u32 %s3186_s8, 4  ;;  %s2422_s12 = int_to_ptr.vmem [resolvable:$true] %s2421_s12 }
 0x432   :  { %s3144_s13 = scalar_lea.vmem %s2422_s12, 1024  ;;  %p3149_p13 = scmp.lt.s32.totalorder %s2422_s12, %s2422_s12 }
 0x433   :  { %p3145_p12 = scmp.ne.s32.totalorder %s2422_s12, %s3144_s13  ;;  %p3150_p0 = scmp.lt.s32.totalorder %s3144_s13, %s3144_s13 }
 0x434   :  { %2288 = vmatpush1.bf16.msra.mxu1 %v2605_v46  ;;  %v1530_v46 = vrot.slane %v3345_v42, %v3306_v37 }
 0x435   :  { %2289 = vmatprep.subr.bf16.mxu1 %v2614_v47  ;;  %v1554_v47 = vrot.slane %v3345_v42, %v1553_v43  ;;  %p3151_p1 = por %p3150_p0, %p3149_p13 }
 0x437   :  { %p3152_p2 = pnand %p3151_p1, %p3145_p12 }
 0x438   :  { %2290 = vmatpush1.bf16.msra.mxu1 %v2613_v50 }
 0x439   :  { %2291 = vmatprep.subr.bf16.mxu1 %v2622_v51 }
 0x43c   :  { %2292 = vmatpush1.bf16.msra.mxu1 %v2621_v54 }
 0x43d   :  { %2293 = vmatprep.subr.bf16.mxu1 %v2630_v55 }
 0x440   :  { %2294 = vmatpush1.bf16.msra.mxu1 %v2629_v58 }
 0x441   :  { %2295 = vmatprep.subr.bf16.mxu1 %v2638_v33 }
 0x444   :  { %2296 = vmatpush1.bf16.msra.mxu1 %v2637_v61 }
 0x445   :  { %2297 = vmatprep.subr.bf16.mxu1 %v2646_v62 }
 0x448   :  { %2298 = vmatpush1.bf16.msra.mxu1 %v2645_v1 }
 0x449   :  { %2299 = vmatprep.subr.bf16.mxu1 %v2654_v5 }
 0x44c   :  { %2300 = vmatpush1.bf16.msra.mxu1 %v2653_v8 }
 0x44d   :  { %2301 = vmatprep.subr.bf16.mxu1 %v2662_v9 }
 0x450   :  { %2302 = vmatpush1.bf16.msra.mxu1 %v2661_v12 }
 0x451   :  { %2303 = vmatprep.subr.bf16.mxu1 %v2670_v13 }
 0x454   :  { %2304 = vmatpush1.bf16.msra.mxu1 %v2669_v16  ;;  %v1537_v16 = vsub.s32 3, %v3297_v34 }
 0x455   :  { %2305 = vmatprep.subr.bf16.mxu1 %v2678_v17  ;;  %v1534_v17 = vrot.slane %v3345_v42, %v1533_v15 }
 0x456   :  { %v1538_v18 = vrot.slane %v3345_v42, %v1537_v16 }
 0x458   :  { %2306 = vmatpush1.bf16.msra.mxu1 %v2677_v20 }
 0x459   :  { %2307 = vmatprep.subr.bf16.mxu1 %v2686_v21 }
 0x45c   :  { %2308 = vmatpush1.bf16.msra.mxu1 %v2685_v24 }
 0x45d   :  { %2309 = vmatprep.subr.bf16.mxu1 %v2694_v25 }
 0x460   :  { %2310 = vmatpush1.bf16.msra.mxu1 %v2693_v28 }
 0x461   :  { %2311 = vmatprep.subr.bf16.mxu1 %v2702_v2 }
 0x464   :  { %2312 = vmatpush1.bf16.msra.mxu1 %v2701_v29 }
 0x465   :  { %2313 = vmatprep.subr.bf16.mxu1 %v2710_v30 }
 0x468   :  { %2314 = vmatpush1.bf16.msra.mxu1 %v2709_v38  ;;  %v1545_v38 = vsub.s32 5, %v3297_v34 }
 0x469   :  { %2315 = vmatprep.subr.bf16.mxu1 %v2718_v39  ;;  %v1542_v39 = vrot.slane %v3345_v42, %v1541_v32 }
 0x46c   :  { %2316 = vmatpush1.bf16.msra.mxu1 %v2717_v40  ;;  %v1546_v40 = vrot.slane %v3345_v42, %v1545_v38 }
 0x46f   :  { %2318 = vmatmul.mubr.bf16.vlgmr.msra.gmra.mrb[16].mxu1 %v3331_v36 }
 0x4c2   :  { %v2237_v36 = vpop.f32.mrb[8].mxu1  ;;  %v2360_v48 = vpop.f32.mrb[4].mxu0 }
 0x4c3   :  { %v2238_v49 = vadd.f32 %v2237_v36, %v1526_v44  ;;  %v2361_v50 = vadd.f32 %v2360_v48, %v1550_v45  ;;  %v2239_v51 = vpop.f32.mrb[9].mxu1  ;;  %v2362_v52 = vpop.f32.mrb[5].mxu0 }
 0x4c4   :  { %v2240_v53 = vadd.f32 %v2239_v51, %v1530_v46  ;;  %v2363_v54 = vadd.f32 %v2362_v52, %v1554_v47  ;;  %v2241_v55 = vpop.f32.mrb[10].mxu1  ;;  %v2364_v56 = vpop.f32.mrb[6].mxu0 }
 0x4c5   :  { %v2367_v57 = vsub.f32 0.0, %v2238_v49  ;;  %v2373_v58 = vsub.f32 0.0, %v2361_v50  ;;  %v2242_v35 = vpop.f32.mrb[11].mxu1  ;;  %v2365_v33 = vpop.f32.mrb[7].mxu0 }
 0x4c6   :  { %v2368_v59 = vsub.f32 0.0, %v2240_v53  ;;  %v2374_v60 = vsub.f32 0.0, %v2363_v54 }
 0x4c7   :  { %v2375_v61 = vmul.f32 1.442695, %v2367_v57  ;;  %v2387_v37 = vmul.f32 1.442695, %v2373_v58 }
 0x4c8   :  { %v2377_v62 = vmul.f32 1.442695, %v2368_v59  ;;  %v2389_v63 = vmul.f32 1.442695, %v2374_v60 }
 0x4c9   :  { %3002 = vpow2.f32 %v2375_v61 }
 0x4ca   :  { %3004 = vpow2.f32 %v2387_v37 }
 0x4cb   :  { %3006 = vpow2.f32 %v2377_v62 }
 0x4cc   :  { %3008 = vpow2.f32 %v2389_v63 }
 0x4d3   :  { %v3003_v0 = vpop.eup %3002 }
 0x4d4   :  { %v3005_v1 = vpop.eup %3004  ;;  %v2391_v5 = vadd.f32 1.0, %v3003_v0 }
 0x4d5   :  { %v3007_v6 = vpop.eup %3006  ;;  %v2397_v7 = vadd.f32 1.0, %v3005_v1 }
 0x4d6   :  { %v3009_v8 = vpop.eup %3008  ;;  %3010 = vrcp.f32 %v2391_v5  ;;  %v2392_v9 = vadd.f32 1.0, %v3007_v6 }
 0x4d7   :  { %3012 = vrcp.f32 %v2397_v7  ;;  %v2398_v10 = vadd.f32 1.0, %v3009_v8 }
 0x4d8   :  { %3014 = vrcp.f32 %v2392_v9 }
 0x4d9   :  { %3016 = vrcp.f32 %v2398_v10 }
 0x4e0   :  { %v3011_v11 = vpop.eup %3010 }
 0x4e1   :  { %v3013_v12 = vpop.eup %3012  ;;  %2407 = vst [vmem:[#allocation11] sm:$0xff] %v3011_v11 }
 0x4e2   :  { %v3015_v13 = vpop.eup %3014  ;;  %2413 = vst [vmem:[#allocation11 + $0x30] sm:$0xff] %v3013_v12 }
 0x4e3   :  { %v3017_v14 = vpop.eup %3016  ;;  %2408 = vst [vmem:[#allocation11 + $0x8] sm:$0xff] %v3015_v13 }
 0x4e4   :  { %2414 = vst [vmem:[#allocation11 + $0x38] sm:$0xff] %v3017_v14 }
 0x502   :  { %v2278_v19 = vpop.f32.mrb[12].mxu1 }
 0x503   :  { %v2279_v20 = vadd.f32 %v2278_v19, %v1534_v17  ;;  %v2280_v21 = vpop.f32.mrb[13].mxu1 }
 0x504   :  { %v2281_v22 = vadd.f32 %v2280_v21, %v1538_v18  ;;  %v2282_v23 = vpop.f32.mrb[14].mxu1 }
 0x505   :  { %v2369_v24 = vsub.f32 0.0, %v2279_v20  ;;  %v2283_v25 = vpop.f32.mrb[15].mxu1 }
 0x506   :  { %v2370_v26 = vsub.f32 0.0, %v2281_v22 }
 0x507   :  { %v2379_v27 = vmul.f32 1.442695, %v2369_v24 }
 0x508   :  { %v2381_v28 = vmul.f32 1.442695, %v2370_v26 }
 0x509   :  { %3018 = vpow2.f32 %v2379_v27 }
 0x50a   :  { %3020 = vpow2.f32 %v2381_v28 }
 0x513   :  { %v3019_v2 = vpop.eup %3018 }
 0x514   :  { %v3021_v3 = vpop.eup %3020  ;;  %v2393_v4 = vadd.f32 1.0, %v3019_v2 }
 0x515   :  { %v2394_v29 = vadd.f32 1.0, %v3021_v3 }
 0x516   :  { %3022 = vrcp.f32 %v2393_v4 }
 0x517   :  { %3024 = vrcp.f32 %v2394_v29 }
 0x520   :  { %v3023_v30 = vpop.eup %3022 }
 0x521   :  { %v3025_v31 = vpop.eup %3024  ;;  %2409 = vst [vmem:[#allocation11 + $0x10] sm:$0xff] %v3023_v30 }
 0x522   :  { %2410 = vst [vmem:[#allocation11 + $0x18] sm:$0xff] %v3025_v31 }
 0x542   :  { %v2319_v41 = vpop.f32.mrb[16].mxu1 }
 0x543   :  { %v2320_v43 = vadd.f32 %v2319_v41, %v1542_v39  ;;  %v2321_v44 = vpop.f32.mrb[17].mxu1 }
 0x544   :  { %v2322_v45 = vadd.f32 %v2321_v44, %v1546_v40  ;;  %v2323_v46 = vpop.f32.mrb[18].mxu1 }
 0x545   :  { %v2371_v47 = vsub.f32 0.0, %v2320_v43  ;;  %v2324_v36 = vpop.f32.mrb[19].mxu1 }
 0x546   :  { %v2372_v48 = vsub.f32 0.0, %v2322_v45 }
 0x547   :  { %v2383_v49 = vmul.f32 1.442695, %v2371_v47 }
 0x548   :  { %v2385_v50 = vmul.f32 1.442695, %v2372_v48 }
 0x549   :  { %3026 = vpow2.f32 %v2383_v49 }
 0x54a   :  { %3028 = vpow2.f32 %v2385_v50 }
 0x553   :  { %v3027_v51 = vpop.eup %3026 }
 0x554   :  { %v3029_v52 = vpop.eup %3028  ;;  %v2395_v53 = vadd.f32 1.0, %v3027_v51 }
 0x555   :  { %v2396_v34 = vadd.f32 1.0, %v3029_v52 }
 0x556   :  { %3030 = vrcp.f32 %v2395_v53 }
 0x557   :  { %3032 = vrcp.f32 %v2396_v34 }
 0x560   :  { %v3031_v42 = vpop.eup %3030 }
 0x561   :  { %v3033_v54 = vpop.eup %3032  ;;  %2411 = vst [vmem:[#allocation11 + $0x20] sm:$0xff] %v3031_v42 }
 0x562   :  { %2412 = vst [vmem:[#allocation11 + $0x28] sm:$0xff] %v3033_v54 }
 0x563   :  { %3155 = shalt.err (!%p3152_p2)
}
 0x564   :  { %s3156_s26 = scalar_lea.hbm %s3383_s9, 1024 }
 0x565   :  { %p3157_p3 = scmp.ne.s32.totalorder %s3383_s9, %s3156_s26  ;;  %p3160_p4 = scmp.lt.u32.totalorder %s3156_s26, %s3383_s9 }
 0x567   :  { %p3162_p5 = pnand %p3160_p4, %p3157_p3 }
 0x569   :  { %3165 = shalt.err (!%p3162_p5)
}
 0x56a   :  { %2424 = dma.vmem_to_hbm [thread:$0]  %s2422_s12, 1024, %s3383_s9, [#allocation4]  }
 0x56b   :  { %3172 = dma.done.wait [#allocation4], 1024  }
 0x56c   :  { %3173 = vsyncadd [#allocation4], 4294966272 }
 0x56d   :  { %2428 = vsyncpa [#allocation3], 1 }
 0x56e   :  { %2429 = vsyncpa [#allocation6], 1 }
 0x56f   :  { %2430 = vsyncpa [#allocation9], 1 }
 0x570   :  { %2431 = vsyncpa [#allocation4], 1 }

</bundles_post_ra>
